<compile_context>
chip_gen: v6e
topology: v6e:2x2x1
jax: 0.10.0
libtpu: 0.0.40
codegen_flags: <defaults>
</compile_context>

<pallas_src>
import functools

import jax
import jax.numpy as jnp
from jax import lax
from jax.experimental import pallas as pl
from jax.experimental.pallas import tpu as pltpu


def _vq_kernel(x_ref, wneg2_ref, w2_ref, w_ref, idx_ref, sse_ref, *, n_rows):
    """Quantize one (tm, D) row tile of flat_x.

    x_ref     : (tm, D)  x tile in its natural row layout (any float dtype)
    wneg2_ref : (K, D)   -2 * codebook (hoisted, resident)
    w2_ref    : (K, 1)   ||w_k||^2      (hoisted, resident)
    w_ref     : (K, D)   codebook       (resident, used for the lookup)
    idx_ref   : (1, tm)  argmin indices, lane-dense output
    sse_ref   : (1, 128) per-tile partial sum of (q - x)^2 in lane 0
    """
    x = x_ref[...].astype(jnp.float32)                 # (tm, D); no-op if f32
    wneg2 = wneg2_ref[...]                             # (K, D)
    w2 = w2_ref[...]                                   # (K, 1)
    w = w_ref[...]                                     # (K, D)
    k = w.shape[0]
    tm = x.shape[0]

    # Distances up to the row-constant ||x||^2 term (doesn't move the argmin):
    #   dist[k, r] = ||w_k||^2 - 2 <w_k, x_r>
    # (K, tm) layout keeps rows on the 128-wide lane axis (lane-dense).
    # The -2 scale is pre-folded into wneg2; only the w2 broadcast-add remains.
    dist = lax.dot_general(wneg2, x, (((1,), (1,)), ((), ())),
                           preferred_element_type=jnp.float32) + w2    # (K, tm)

    # argmin over the codebook axis, first-occurrence tie-break like torch.
    min_d = jnp.min(dist, axis=0, keepdims=True)                       # (1, tm)
    kiota = lax.broadcasted_iota(jnp.int32, dist.shape, 0)             # (K, tm)
    idx = jnp.min(jnp.where(dist == min_d, kiota, k),
                  axis=0, keepdims=True)                               # (1, tm)
    idx = jnp.minimum(idx, k - 1)        # NaN-input guard; no-op for finite x
    idx_ref[...] = idx

    # Exact codebook lookup as a one-hot matmul (only used for the fused loss;
    # the quantized rows themselves are rebuilt in the wrapper from idx).
    onehot = (kiota == idx).astype(jnp.float32)                        # (K, tm)
    q = lax.dot_general(onehot, w, (((0,), (0,)), ((), ())),
                        preferred_element_type=jnp.float32)            # (tm, D)

    # Fused VQ loss partial sum, masking rows past the end of the array so the
    # ragged last block (no explicit jnp.pad pass) contributes exactly zero.
    diff = q - x
    row_sq = jnp.sum(diff * diff, axis=1, keepdims=True)               # (tm, 1)
    row = pl.program_id(0) * tm + lax.broadcasted_iota(jnp.int32, (tm, 1), 0)
    sse = jnp.sum(jnp.where(row < n_rows, row_sq, 0.0))                # scalar

    lane = lax.broadcasted_iota(jnp.int32, (1, 128), 1)
    sse_ref[...] = jnp.where(lane == 0, sse, 0.0)                      # (1, 128)


def vector_quantizer_forward(x, embedding_weight, commitment_cost, *, tm=16384):
    """Pallas implementation of VectorQuantizer.forward (forward values).

    x                : (..., D) float, embedding dim last.
    embedding_weight : (K, D) float codebook.
    Returns (quantized, loss, indices) with quantized.shape == x.shape,
    scalar loss, indices of shape (N, 1) int32, N = prod(x.shape[:-1]).
    """
    k, d = embedding_weight.shape
    orig_shape = x.shape
    flat_x = x.reshape(-1, d)            # native dtype/layout: no transpose,
    n = flat_x.shape[0]                  # no pad, no upcast HBM passes

    # Row tile: default 16K (sweep 8K-32K on v6e, keep <=16K under v7x's
    # 32 MiB scoped VMEM default).  Clamp to the full array for tiny inputs.
    tm = int(tm)
    if tm >= n:
        tm = n                                    # single full-array block
    else:
        tm = max(128, (tm // 128) * 128)          # lane-dense idx tiles
    grid_len = pl.cdiv(n, tm)    # ragged last block handled by Pallas, masked
                                 # in-kernel for the loss, sliced off for idx

    w = embedding_weight.astype(jnp.float32)            # (K, D) tiny, resident
    wneg2 = -2.0 * w                                    # hoisted -2 scale
    w2 = jnp.sum(w * w, axis=1, keepdims=True)          # (K, 1) hoisted norms

    kernel = functools.partial(_vq_kernel, n_rows=n)
    idx_out, sse_out = pl.pallas_call(
        kernel,
        out_shape=(
            jax.ShapeDtypeStruct((1, n), jnp.int32),
            jax.ShapeDtypeStruct((1, grid_len * 128), jnp.float32),
        ),
        grid_spec=pltpu.PrefetchScalarGridSpec(
            num_scalar_prefetch=0,
            grid=(grid_len,),
            in_specs=[
                pl.BlockSpec((tm, d), lambda i: (i, 0)),   # x rows, native layout
                pl.BlockSpec((k, d), lambda i: (0, 0)),    # -2*W   (resident)
                pl.BlockSpec((k, 1), lambda i: (0, 0)),    # ||w||^2 (resident)
                pl.BlockSpec((k, d), lambda i: (0, 0)),    # W       (resident)
            ],
            out_specs=(
                pl.BlockSpec((1, tm), lambda i: (0, i)),    # indices, lane-dense
                pl.BlockSpec((1, 128), lambda i: (0, i)),   # per-tile sum (q-x)^2
            ),
        ),
        # No cross-step state -> "parallel" (lets v7x shard tiles across both
        # TensorCores); 48 MiB VMEM limit stays under v7x's 64 MiB physical.
        compiler_params=pltpu.CompilerParams(
            dimension_semantics=("parallel",),
            vmem_limit_bytes=48 * 1024 * 1024),
    )(flat_x, wneg2, w2, w)

    idx_flat = idx_out.reshape(n)
    indices = idx_flat.reshape(n, 1)

    # Codebook gather directly in the natural (..., D) layout.
    quantized = jnp.take(w, idx_flat, axis=0).reshape(orig_shape)

    # Forward loss from the fused in-kernel reduction.  q_latent_loss and
    # e_latent_loss have identical forward values (stop_gradient is identity
    # in the forward pass), so loss = mse + commitment_cost * mse.
    mse = jnp.sum(sse_out) / (n * d)
    loss = mse + commitment_cost * mse
    # TODO(synk): custom_vjp to restore the distinct q/e gradient routing for
    # training (pallas_call has no VJP).

    # Straight-through estimator (value-identical to `quantized`).
    quantized_st = x + lax.stop_gradient(quantized - x)
    return quantized_st, loss, indices


if __name__ == "__main__":
    num_embeddings = 32
    embedding_dim = 16
    commitment_cost = 0.25

    key = jax.random.PRNGKey(0)
    kx, kw, kx2 = jax.random.split(key, 3)

    # Deterministic codebook init, mirroring uniform_(-1/K, 1/K).
    embedding_weight = jax.random.uniform(
        kw, (num_embeddings, embedding_dim),
        minval=-1.0 / num_embeddings, maxval=1.0 / num_embeddings,
        dtype=jnp.float32)

    # (B, H, W, D) with embedding_dim last -> flattens to (B*H*W, D) rows.
    x = jax.random.normal(kx, (2, 16, 16, embedding_dim), dtype=jnp.float32)

    vq = jax.jit(functools.partial(vector_quantizer_forward,
                                   commitment_cost=commitment_cost))
    quantized, loss, indices = vq(x, embedding_weight)
    jax.block_until_ready((quantized, loss, indices))

    # Pure-JAX reference (same math as the PyTorch module, forward values).
    def reference(xv, wv):
        flat = xv.reshape(-1, embedding_dim).astype(jnp.float32)
        dist = (jnp.sum(flat * flat, axis=1, keepdims=True)
                - 2.0 * flat @ wv.T + jnp.sum(wv * wv, axis=1))
        ridx = jnp.argmin(dist, axis=1)
        q = wv[ridx].reshape(xv.shape)
        ref_mse = jnp.mean((q - xv) ** 2)
        return xv + (q - xv), ref_mse + commitment_cost * ref_mse, ridx

    n = x.shape[0] * x.shape[1] * x.shape[2]
    q_ref, loss_ref, idx_ref = reference(x, embedding_weight)
    assert quantized.shape == x.shape
    assert indices.shape == (n, 1) and indices.dtype == jnp.int32
    assert loss.shape == ()
    assert bool(jnp.isfinite(loss))
    assert bool(jnp.all(indices[:, 0] == idx_ref))
    assert bool(jnp.allclose(quantized, q_ref, atol=1e-5))
    assert bool(jnp.allclose(loss, loss_ref, rtol=1e-5, atol=1e-7))

    # Exercise the multi-tile + ragged-last-block (masked loss) path.
    x2 = jax.random.normal(kx2, (3, 7, 13, embedding_dim), dtype=jnp.float32)
    vq_small = jax.jit(functools.partial(vector_quantizer_forward,
                                         commitment_cost=commitment_cost,
                                         tm=128))
    q2, loss2, idx2 = vq_small(x2, embedding_weight)
    jax.block_until_ready((q2, loss2, idx2))
    q2_ref, loss2_ref, idx2_ref = reference(x2, embedding_weight)
    assert bool(jnp.all(idx2[:, 0] == idx2_ref))
    assert bool(jnp.allclose(q2, q2_ref, atol=1e-5))
    assert bool(jnp.allclose(loss2, loss2_ref, rtol=1e-5, atol=1e-7))

    print("KERNEL_OK")
</pallas_src>

<mosaic_0001>
module attributes {stable_mosaic.version = 11 : i64} {
  func.func @_vq_kernel(%arg0: i32, %arg1: memref<512x16xf32, #tpu.memory_space<vmem>>, %arg2: memref<32x16xf32, #tpu.memory_space<vmem>>, %arg3: memref<32x1xf32, #tpu.memory_space<vmem>>, %arg4: memref<32x16xf32, #tpu.memory_space<vmem>>, %arg5: memref<1x512xi32, #tpu.memory_space<vmem>>, %arg6: memref<1x128xf32, #tpu.memory_space<vmem>>) attributes {dimension_semantics = [#tpu.dimension_semantics<parallel>], iteration_bounds = array<i64: 1>, scalar_prefetch = 0 : i64, scratch_operands = 0 : i64, tpu.core_type = #tpu.core_type<tc>, window_params = [{transform_indices = @transform_0, window_bounds = array<i64: 512, 16>}, {pipeline_mode = #tpu.pipeline_mode<synchronous>, transform_indices = @transform_1, window_bounds = array<i64: 32, 16>}, {pipeline_mode = #tpu.pipeline_mode<synchronous>, transform_indices = @transform_2, window_bounds = array<i64: 32, 1>}, {pipeline_mode = #tpu.pipeline_mode<synchronous>, transform_indices = @transform_3, window_bounds = array<i64: 32, 16>}, {transform_indices = @transform_4, window_bounds = array<i64: 1, 512>}, {transform_indices = @transform_5, window_bounds = array<i64: 1, 128>}]} {
    %c0 = arith.constant 0 : index
    %c0_0 = arith.constant 0 : index
    %0 = vector.load %arg1[%c0, %c0_0] : memref<512x16xf32, #tpu.memory_space<vmem>>, vector<512x16xf32>
    %c0_1 = arith.constant 0 : index
    %c0_2 = arith.constant 0 : index
    %1 = vector.load %arg2[%c0_1, %c0_2] : memref<32x16xf32, #tpu.memory_space<vmem>>, vector<32x16xf32>
    %c0_3 = arith.constant 0 : index
    %c0_4 = arith.constant 0 : index
    %2 = vector.load %arg3[%c0_3, %c0_4] : memref<32x1xf32, #tpu.memory_space<vmem>>, vector<32x1xf32>
    %c0_5 = arith.constant 0 : index
    %c0_6 = arith.constant 0 : index
    %3 = vector.load %arg4[%c0_5, %c0_6] : memref<32x16xf32, #tpu.memory_space<vmem>>, vector<32x16xf32>
    %cst = arith.constant dense<0.000000e+00> : vector<32x512xf32>
    %4 = tpu.matmul %1, %0, %cst {dimension_numbers = #tpu.dot_dimension_numbers<[1], [1], [0], [0], [0, 0, 1, 0], [], []>} : vector<32x16xf32>, vector<512x16xf32>, vector<32x512xf32> -> vector<32x512xf32>
    %5 = vector.broadcast %2 : vector<32x1xf32> to vector<32x512xf32>
    %6 = arith.addf %4, %5 : vector<32x512xf32>
    %cst_7 = arith.constant dense<0x7F800000> : vector<512xf32>
    %7 = vector.multi_reduction <minimumf>, %6, %cst_7 [0] : vector<32x512xf32> to vector<512xf32>
    %8 = vector.shape_cast %7 : vector<512xf32> to vector<1x512xf32>
    %9 = tpu.iota {dimensions = array<i32: 0>} : vector<32x512xi32>
    %10 = vector.broadcast %8 : vector<1x512xf32> to vector<32x512xf32>
    %11 = arith.cmpf oeq, %6, %10 : vector<32x512xf32>
    %c32_i32 = arith.constant 32 : i32
    %12 = vector.broadcast %c32_i32 : i32 to vector<32x512xi32>
    %13 = arith.select %11, %9, %12 : vector<32x512xi1>, vector<32x512xi32>
    %cst_8 = arith.constant dense<2147483647> : vector<512xi32>
    %14 = vector.multi_reduction <minsi>, %13, %cst_8 [0] : vector<32x512xi32> to vector<512xi32>
    %15 = vector.shape_cast %14 : vector<512xi32> to vector<1x512xi32>
    %c31_i32 = arith.constant 31 : i32
    %16 = vector.broadcast %c31_i32 : i32 to vector<1x512xi32>
    %17 = arith.minsi %15, %16 : vector<1x512xi32>
    %c0_9 = arith.constant 0 : index
    %c0_10 = arith.constant 0 : index
    %18 = vector.load %arg5[%c0_9, %c0_10] : memref<1x512xi32, #tpu.memory_space<vmem>>, vector<1x512xi32>
    tpu.vector_store %arg5[%c0_9, %c0_10], %17 {strides = array<i32>} : memref<1x512xi32, #tpu.memory_space<vmem>>, vector<1x512xi32>,
    %19 = vector.broadcast %17 : vector<1x512xi32> to vector<32x512xi32>
    %20 = arith.cmpi eq, %9, %19 : vector<32x512xi32>
    %21 = arith.extui %20 : vector<32x512xi1> to vector<32x512xi32>
    %22 = arith.sitofp %21 : vector<32x512xi32> to vector<32x512xf32>
    %cst_11 = arith.constant dense<0.000000e+00> : vector<512x16xf32>
    %23 = tpu.matmul %22, %3, %cst_11 {dimension_numbers = #tpu.dot_dimension_numbers<[0], [0], [1], [1], [0, 1, 1, 1], [], []>} : vector<32x512xf32>, vector<32x16xf32>, vector<512x16xf32> -> vector<512x16xf32>
    %24 = arith.subf %23, %0 : vector<512x16xf32>
    %25 = arith.mulf %24, %24 : vector<512x16xf32>
    %cst_12 = arith.constant dense<0.000000e+00> : vector<512xf32>
    %26 = vector.multi_reduction <add>, %25, %cst_12 [1] : vector<512x16xf32> to vector<512xf32>
    %27 = vector.shape_cast %26 : vector<512xf32> to vector<512x1xf32>
    %c512_i32 = arith.constant 512 : i32
    %28 = arith.muli %arg0, %c512_i32 : i32
    %29 = tpu.iota {dimensions = array<i32: 0>} : vector<512x1xi32>
    %30 = vector.broadcast %28 : i32 to vector<512x1xi32>
    %31 = arith.addi %30, %29 : vector<512x1xi32>
    %c512_i32_13 = arith.constant 512 : i32
    %32 = vector.broadcast %c512_i32_13 : i32 to vector<512x1xi32>
    %33 = arith.cmpi slt, %31, %32 : vector<512x1xi32>
    %cst_14 = arith.constant 0.000000e+00 : f32
    %34 = vector.broadcast %cst_14 : f32 to vector<512x1xf32>
    %35 = arith.select %33, %27, %34 : vector<512x1xi1>, vector<512x1xf32>
    %36 = vector.shape_cast %35 : vector<512x1xf32> to vector<1x512x1xf32>
    %cst_15 = arith.constant dense<0.000000e+00> : vector<1xf32>
    %37 = vector.multi_reduction <add>, %36, %cst_15 [1, 2] : vector<1x512x1xf32> to vector<1xf32>
    %38 = vector.shape_cast %37 : vector<1xf32> to vector<1x1x1xf32>
    %39 = vector.extract %38[0, 0, 0] : f32 from vector<1x1x1xf32>
    %40 = tpu.iota {dimensions = array<i32: 1>} : vector<1x128xi32>
    %c0_i32 = arith.constant 0 : i32
    %41 = vector.broadcast %c0_i32 : i32 to vector<1x128xi32>
    %42 = arith.cmpi eq, %40, %41 : vector<1x128xi32>
    %cst_16 = arith.constant 0.000000e+00 : f32
    %43 = vector.broadcast %39 : f32 to vector<1x128xf32>
    %44 = vector.broadcast %cst_16 : f32 to vector<1x128xf32>
    %45 = arith.select %42, %43, %44 : vector<1x128xi1>, vector<1x128xf32>
    %c0_17 = arith.constant 0 : index
    %c0_18 = arith.constant 0 : index
    %46 = vector.load %arg6[%c0_17, %c0_18] : memref<1x128xf32, #tpu.memory_space<vmem>>, vector<1x128xf32>
    tpu.vector_store %arg6[%c0_17, %c0_18], %45 {strides = array<i32>} : memref<1x128xf32, #tpu.memory_space<vmem>>, vector<1x128xf32>,
    return
  }
  func.func @transform_0(%arg0: i32) -> (i32, i32) {
    %c0_i32 = arith.constant 0 : i32
    %c0_i32_0 = arith.constant 0 : i32
    return %arg0, %c0_i32 : i32, i32
  }
  func.func @transform_1(%arg0: i32) -> (i32, i32) {
    %c0_i32 = arith.constant 0 : i32
    %c0_i32_0 = arith.constant 0 : i32
    %c0_i32_1 = arith.constant 0 : i32
    return %c0_i32, %c0_i32_0 : i32, i32
  }
  func.func @transform_2(%arg0: i32) -> (i32, i32) {
    %c0_i32 = arith.constant 0 : i32
    %c0_i32_0 = arith.constant 0 : i32
    %c0_i32_1 = arith.constant 0 : i32
    return %c0_i32, %c0_i32_0 : i32, i32
  }
  func.func @transform_3(%arg0: i32) -> (i32, i32) {
    %c0_i32 = arith.constant 0 : i32
    %c0_i32_0 = arith.constant 0 : i32
    %c0_i32_1 = arith.constant 0 : i32
    return %c0_i32, %c0_i32_0 : i32, i32
  }
  func.func @transform_4(%arg0: i32) -> (i32, i32) {
    %c0_i32 = arith.constant 0 : i32
    %c0_i32_0 = arith.constant 0 : i32
    return %c0_i32, %arg0 : i32, i32
  }
  func.func @transform_5(%arg0: i32) -> (i32, i32) {
    %c0_i32 = arith.constant 0 : i32
    %c0_i32_0 = arith.constant 0 : i32
    return %c0_i32, %arg0 : i32, i32
  }
}

</mosaic_0001>

<bundles_post_ra>
// kernel: vector_quantizer_forward.1
= control target key start
LH: loop header
LB: loop body
LE: loop exit
PB: predicated region body
PF: predicated region fallthrough
CT: control target
= control target key end

     0   :  { %11 = vsyncpa [#allocation3], 0  ;;  %s2656_s18 = smov [#allocation2]   ;;  %s3161_s0 = inlined_call_operand.hbm [shape: f32[512,16], index: 0, kind: input, shape index: {}]   ;;  %s3162_s1 = inlined_call_operand.vmem [shape: f32[32,16], index: 1, kind: input, shape index: {}]   ;;  %s3163_s2 = inlined_call_operand.vmem [shape: f32[32,1], index: 2, kind: input, shape index: {}]   ;;  %s3164_s3 = inlined_call_operand.vmem [shape: f32[32,16], index: 3, kind: input, shape index: {}]   ;;  %s3165_s4 = inlined_call_operand.vmem [shape: s32[1,512], index: 4, kind: output, shape index: {0}]   ;;  %s3166_s5 = inlined_call_operand.vmem [shape: f32[1,128], index: 5, kind: output, shape index: {1}]  }
   0x1   :  { %s17_s19 = sshll.u32 %s2656_s18, 4  ;;  %s18_s19 = int_to_ptr.vmem [resolvable:$true] %s17_s19 }
   0x2   :  { %s2642_s20 = scalar_lea.vmem %s18_s19, 8192  ;;  %p2647_p1 = scmp.lt.s32.totalorder %s18_s19, %s18_s19 }
   0x3   :  { %p2643_p0 = scmp.ne.s32.totalorder %s18_s19, %s2642_s20  ;;  %p2648_p2 = scmp.lt.s32.totalorder %s2642_s20, %s2642_s20 }
   0x5   :  { %p2649_p3 = por %p2648_p2, %p2647_p1 }
   0x7   :  { %p2650_p4 = pnand %p2649_p3, %p2643_p0 }
   0x9   :  { %2653 = shalt.err (!%p2650_p4)
}
   0xa   :  { %s2657_s21 = smov 128   ;;  %s2658_s22 = smov 8  }
   0xb   :  { %23 = dma.hbm_to_vmem [thread:$0]  %s3161_s0, 8192, %s18_s19, [#allocation3], %s2657_s21, %s2657_s21, %s2658_s22  }
   0xc   :  { %2654 = dma.done.wait [#allocation3], 8192  }
   0xd   :  { %2655 = vsyncadd [#allocation3], 4294959104  ;;  %vm129_vm0 = vcmask 130048   ;;  %v64_v0 = vld [vmem:[#allocation2 + $0xf8] sm:$0xff]  ;;  %v63_v2 = vld [vmem:[#allocation2 + $0xf0] sm:$0xff]  ;;  %v2659_v4 = vmov 0  }
   0xe   :  { %v48_v1 = vld [vmem:[#allocation2 + $0x78] sm:$0xff]  ;;  %2314 = vmatprep.subr.msk.mxu1 %vm129_vm0, %v64_v0  ;;  %v47_v3 = vld [vmem:[#allocation2 + $0x70] sm:$0xff]  ;;  %2574 = vset.pattern.permute.xlu0 %v2659_v4  ;;  %v62_v5 = vld [vmem:[#allocation2 + $0xe8] sm:$0xff] }
   0xf   :  { %2315 = vmatpush3.xpose.msk.msra.mxu1 %vm129_vm0, %v48_v1  ;;  %2575 = vset.pattern.permute.xlu1 %v2659_v4  ;;  %v46_v6 = vld [vmem:[#allocation2 + $0x68] sm:$0xff]  ;;  %v61_v7 = vld [vmem:[#allocation2 + $0xe0] sm:$0xff]  ;;  %v60_v10 = vld [vmem:[#allocation2 + $0xd8] sm:$0xff] }
  0x10   :  { %2316 = vmatprep.subr.msk.mxu1 %vm129_vm0, %v63_v2  ;;  %v2704_v8 = vld [vmem:[%s3162_s1] sm:$0xff]  ;;  %v44_v11 = vld [vmem:[#allocation2 + $0x58] sm:$0xff]  ;;  %v59_v12 = vld [vmem:[#allocation2 + $0xd0] sm:$0xff] }
  0x11   :  { %v45_v9 = vld [vmem:[#allocation2 + $0x60] sm:$0xff]  ;;  %2346 = vmatprep.mubr.msk.f32.mxu1 %vm129_vm0, %v2704_v8  ;;  %v43_v13 = vld [vmem:[#allocation2 + $0x50] sm:$0xff]  ;;  %v58_v14 = vld [vmem:[#allocation2 + $0xc8] sm:$0xff] }
  0x12   :  { %v101_v15 = vld [vmem:[%s3163_s2] sm:$0xff]  ;;  %v42_v16 = vld [vmem:[#allocation2 + $0x48] sm:$0xff]  ;;  %v103_v17 = vld [vmem:[%s3163_s2 + $0x10] sm:$0xff] }
  0x13   :  { %2317 = vmatpush3.xpose.msk.msra.mxu1 %vm129_vm0, %v47_v3  ;;  %111 = vperm.xlu0 %2574, %v101_v15   ;;  %v57_v18 = vld [vmem:[#allocation2 + $0xc0] sm:$0xff]  ;;  %v102_v19 = vld [vmem:[%s3163_s2 + $0x8] sm:$0xff]  ;;  %v104_v20 = vld [vmem:[%s3163_s2 + $0x18] sm:$0xff] }
  0x14   :  { %2318 = vmatprep.subr.msk.mxu1 %vm129_vm0, %v62_v5  ;;  %121 = vperm.xlu1 %2575, %v103_v17   ;;  %v41_v21 = vld [vmem:[#allocation2 + $0x40] sm:$0xff]  ;;  %v56_v22 = vld [vmem:[#allocation2 + $0xb8] sm:$0xff]  ;;  %v55_v24 = vld [vmem:[#allocation2 + $0xb0] sm:$0xff] }
  0x15   :  { %v40_v23 = vld [vmem:[#allocation2 + $0x38] sm:$0xff]  ;;  %v39_v25 = vld [vmem:[#allocation2 + $0x30] sm:$0xff]  ;;  %v54_v26 = vld [vmem:[#allocation2 + $0xa8] sm:$0xff] }
  0x16   :  { %v2735_v27 = vld [vmem:[#allocation2 + $0x28] sm:$0xff]  ;;  %v53_v28 = vld [vmem:[#allocation2 + $0xa0] sm:$0xff]  ;;  %v52_v30 = vld [vmem:[#allocation2 + $0x98] sm:$0xff] }
  0x17   :  { %2319 = vmatpush3.xpose.msk.msra.mxu1 %vm129_vm0, %v46_v6  ;;  %116 = vperm.xlu0 %2574, %v102_v19   ;;  %v2740_v29 = vld [vmem:[#allocation2 + $0x20] sm:$0xff]  ;;  %v2745_v31 = vld [vmem:[#allocation2 + $0x18] sm:$0xff]  ;;  %v51_v32 = vld [vmem:[#allocation2 + $0x90] sm:$0xff] }
  0x18   :  { %2320 = vmatprep.subr.msk.mxu1 %vm129_vm0, %v61_v7  ;;  %126 = vperm.xlu1 %2575, %v104_v20   ;;  %v2750_v33 = vld [vmem:[#allocation2 + $0x10] sm:$0xff]  ;;  %v50_v34 = vld [vmem:[#allocation2 + $0x88] sm:$0xff]  ;;  %v49_v36 = vld [vmem:[#allocation2 + $0x80] sm:$0xff] }
  0x19   :  { %v2755_v35 = vld [vmem:[#allocation2 + $0x8] sm:$0xff]  ;;  %v2760_v37 = vld [vmem:[#allocation2] sm:$0xff]  ;;  %v96_v38 = vld [vmem:[#allocation2 + $0x1f8] sm:$0xff] }
  0x1a   :  { %v80_v39 = vld [vmem:[#allocation2 + $0x178] sm:$0xff]  ;;  %v2768_v40 = vld [vmem:[%s3162_s1 + $0x8] sm:$0xff]  ;;  %v95_v41 = vld [vmem:[#allocation2 + $0x1f0] sm:$0xff] }
  0x1b   :  { %2321 = vmatpush3.xpose.msk.msra.mxu1 %vm129_vm0, %v45_v9  ;;  %v79_v42 = vld [vmem:[#allocation2 + $0x170] sm:$0xff]  ;;  %v94_v44 = vld [vmem:[#allocation2 + $0x1e8] sm:$0xff]  ;;  %v2790_v46 = vld [vmem:[%s3162_s1 + $0x18] sm:$0xff] }
  0x1c   :  { %2322 = vmatprep.subr.msk.mxu1 %vm129_vm0, %v60_v10  ;;  %v2779_v43 = vld [vmem:[%s3162_s1 + $0x10] sm:$0xff]  ;;  %v78_v45 = vld [vmem:[#allocation2 + $0x168] sm:$0xff]  ;;  %v93_v47 = vld [vmem:[#allocation2 + $0x1e0] sm:$0xff] }
  0x1d   :  { %v77_v48 = vld [vmem:[#allocation2 + $0x160] sm:$0xff]  ;;  %v92_v49 = vld [vmem:[#allocation2 + $0x1d8] sm:$0xff]  ;;  %v91_v51 = vld [vmem:[#allocation2 + $0x1d0] sm:$0xff] }
  0x1e   :  { %v76_v50 = vld [vmem:[#allocation2 + $0x158] sm:$0xff]  ;;  %v75_v52 = vld [vmem:[#allocation2 + $0x150] sm:$0xff]  ;;  %v90_v53 = vld [vmem:[#allocation2 + $0x1c8] sm:$0xff] }
  0x1f   :  { %2323 = vmatpush3.xpose.msk.msra.mxu1 %vm129_vm0, %v44_v11  ;;  %v74_v54 = vld [vmem:[#allocation2 + $0x148] sm:$0xff]  ;;  %v89_v55 = vld [vmem:[#allocation2 + $0x1c0] sm:$0xff]  ;;  %v88_v57 = vld [vmem:[#allocation2 + $0x1b8] sm:$0xff] }
  0x20   :  { %2324 = vmatprep.subr.msk.mxu1 %vm129_vm0, %v59_v12  ;;  %v73_v56 = vld [vmem:[#allocation2 + $0x140] sm:$0xff]  ;;  %v72_v58 = vld [vmem:[#allocation2 + $0x138] sm:$0xff]  ;;  %v87_v59 = vld [vmem:[#allocation2 + $0x1b0] sm:$0xff] }
  0x21   :  { %v71_v60 = vld [vmem:[#allocation2 + $0x130] sm:$0xff]  ;;  %v86_v61 = vld [vmem:[#allocation2 + $0x1a8] sm:$0xff]  ;;  %v85_v63 = vld [vmem:[#allocation2 + $0x1a0] sm:$0xff] }
  0x22   :  { %v70_v62 = vld [vmem:[#allocation2 + $0x128] sm:$0xff]  ;;  %v69_v0 = vld [vmem:[#allocation2 + $0x120] sm:$0xff]  ;;  %v84_v1 = vld [vmem:[#allocation2 + $0x198] sm:$0xff] }
  0x23   :  { %2325 = vmatpush3.xpose.msk.msra.mxu1 %vm129_vm0, %v43_v13  ;;  %v68_v2 = vld [vmem:[#allocation2 + $0x118] sm:$0xff]  ;;  %v83_v3 = vld [vmem:[#allocation2 + $0x190] sm:$0xff]  ;;  %v82_v5 = vld [vmem:[#allocation2 + $0x188] sm:$0xff] }
  0x24   :  { %2326 = vmatprep.subr.msk.mxu1 %vm129_vm0, %v58_v14  ;;  %v67_v4 = vld [vmem:[#allocation2 + $0x110] sm:$0xff]  ;;  %v66_v6 = vld [vmem:[#allocation2 + $0x108] sm:$0xff]  ;;  %v81_v7 = vld [vmem:[#allocation2 + $0x180] sm:$0xff] }
  0x25   :  { %v65_v9 = vld [vmem:[#allocation2 + $0x100] sm:$0xff]  ;;  %v108_v14 = vld [vmem:[%s3164_s3 + $0x18] sm:$0xff]  ;;  %v107_v15 = vld [vmem:[%s3164_s3 + $0x10] sm:$0xff] }
  0x26   :  { %2462 = vmatprep.subr.mxu0 %v108_v14 }
  0x27   :  { %2327 = vmatpush3.xpose.msk.msra.mxu1 %vm129_vm0, %v42_v16  ;;  %2463 = vmatpush3.msra.mxu0 %v108_v14 }
  0x28   :  { %2328 = vmatprep.subr.msk.mxu1 %vm129_vm0, %v57_v18  ;;  %2464 = vmatprep.subr.mxu0 %v107_v15 }
  0x29   :  { %2465 = vmatpush3.msra.mxu0 %v107_v15 }
  0x2b   :  { %2329 = vmatpush3.xpose.msk.msra.mxu1 %vm129_vm0, %v41_v21 }
  0x2c   :  { %2330 = vmatprep.subr.msk.mxu1 %vm129_vm0, %v56_v22 }
  0x2f   :  { %2331 = vmatpush3.xpose.msk.msra.mxu1 %vm129_vm0, %v40_v23 }
  0x30   :  { %2332 = vmatprep.subr.msk.mxu1 %vm129_vm0, %v55_v24 }
  0x33   :  { %2333 = vmatpush3.xpose.msk.msra.mxu1 %vm129_vm0, %v39_v25 }
  0x34   :  { %2334 = vmatprep.subr.msk.mxu1 %vm129_vm0, %v54_v26 }
  0x37   :  { %2335 = vmatpush3.xpose.msk.msra.mxu1 %vm129_vm0, %v2735_v27 }
  0x38   :  { %2336 = vmatprep.subr.msk.mxu1 %vm129_vm0, %v53_v28 }
  0x3b   :  { %2337 = vmatpush3.xpose.msk.msra.mxu1 %vm129_vm0, %v2740_v29 }
  0x3c   :  { %2338 = vmatprep.subr.msk.mxu1 %vm129_vm0, %v52_v30 }
  0x3f   :  { %2339 = vmatpush3.xpose.msk.msra.mxu1 %vm129_vm0, %v2745_v31 }
  0x40   :  { %2340 = vmatprep.subr.msk.mxu1 %vm129_vm0, %v51_v32 }
  0x43   :  { %2341 = vmatpush3.xpose.msk.msra.mxu1 %vm129_vm0, %v2750_v33 }
  0x44   :  { %2342 = vmatprep.subr.msk.mxu1 %vm129_vm0, %v50_v34 }
  0x47   :  { %2343 = vmatpush3.xpose.msk.msra.mxu1 %vm129_vm0, %v2755_v35 }
  0x48   :  { %2344 = vmatprep.subr.msk.mxu1 %vm129_vm0, %v49_v36 }
  0x4b   :  { %2345 = vmatpush3.xpose.msk.msra.mxu1 %vm129_vm0, %v2760_v37 }
  0x4c   :  { %2354 = vmatprep.subr.msk.mxu1 %vm129_vm0, %v96_v38 }
  0x4e   :  { %2347 = vmatmul.mubr.msk.f32.vlgmr.msra.gmra.mxu1 %vm129_vm0, %v2704_v8 }
  0x4f   :  { %2355 = vmatpush3.xpose.msk.msra.mxu1 %vm129_vm0, %v80_v39  ;;  %2348 = vmatprep.mubr.msk.f32.mxu1 %vm129_vm0, %v2768_v40 }
  0x50   :  { %2356 = vmatprep.subr.msk.mxu1 %vm129_vm0, %v95_v41 }
  0x52   :  { %2349 = vmatmul.mubr.msk.f32.gmra.mxu1 %vm129_vm0, %v2768_v40 }
  0x53   :  { %2357 = vmatpush3.xpose.msk.msra.mxu1 %vm129_vm0, %v79_v42  ;;  %2350 = vmatprep.mubr.msk.f32.mxu1 %vm129_vm0, %v2779_v43 }
  0x54   :  { %2358 = vmatprep.subr.msk.mxu1 %vm129_vm0, %v94_v44  ;;  %v548_v44 = vlaneseq }
  0x56   :  { %2351 = vmatmul.mubr.msk.f32.gmra.mxu1 %vm129_vm0, %v2779_v43 }
  0x57   :  { %2359 = vmatpush3.xpose.msk.msra.mxu1 %vm129_vm0, %v78_v45  ;;  %2352 = vmatprep.mubr.msk.f32.mxu1 %vm129_vm0, %v2790_v46 }
  0x58   :  { %2360 = vmatprep.subr.msk.mxu1 %vm129_vm0, %v93_v47 }
  0x5a   :  { %2353 = vmatmul.mubr.msk.f32.gmra.mxu1 %vm129_vm0, %v2790_v46 }
  0x5b   :  { %2361 = vmatpush3.xpose.msk.msra.mxu1 %vm129_vm0, %v77_v48  ;;  %2386 = vmatprep.mubr.msk.f32.mxu1 %vm129_vm0, %v2704_v8 }
  0x5c   :  { %2362 = vmatprep.subr.msk.mxu1 %vm129_vm0, %v92_v49  ;;  %v2864_v49 = vshrl.u32 %v548_v44, 7 }
  0x5f   :  { %2363 = vmatpush3.xpose.msk.msra.mxu1 %vm129_vm0, %v76_v50 }
  0x60   :  { %2364 = vmatprep.subr.msk.mxu1 %vm129_vm0, %v91_v51 }
  0x63   :  { %2365 = vmatpush3.xpose.msk.msra.mxu1 %vm129_vm0, %v75_v52 }
  0x64   :  { %2366 = vmatprep.subr.msk.mxu1 %vm129_vm0, %v90_v53 }
  0x67   :  { %2367 = vmatpush3.xpose.msk.msra.mxu1 %vm129_vm0, %v74_v54  ;;  %v2867_v54 = vadd.s32 8, %v2864_v49 }
  0x68   :  { %2368 = vmatprep.subr.msk.mxu1 %vm129_vm0, %v89_v55 }
  0x6b   :  { %2369 = vmatpush3.xpose.msk.msra.mxu1 %vm129_vm0, %v73_v56 }
  0x6c   :  { %2370 = vmatprep.subr.msk.mxu1 %vm129_vm0, %v88_v57  ;;  %v2870_v57 = vadd.s32 16, %v2864_v49 }
  0x6f   :  { %2371 = vmatpush3.xpose.msk.msra.mxu1 %vm129_vm0, %v72_v58  ;;  %v2873_v58 = vadd.s32 24, %v2864_v49 }
  0x70   :  { %2372 = vmatprep.subr.msk.mxu1 %vm129_vm0, %v87_v59 }
  0x73   :  { %2373 = vmatpush3.xpose.msk.msra.mxu1 %vm129_vm0, %v71_v60 }
  0x74   :  { %2374 = vmatprep.subr.msk.mxu1 %vm129_vm0, %v86_v61 }
  0x77   :  { %2375 = vmatpush3.xpose.msk.msra.mxu1 %vm129_vm0, %v70_v62 }
  0x78   :  { %2376 = vmatprep.subr.msk.mxu1 %vm129_vm0, %v85_v63 }
  0x7b   :  { %2377 = vmatpush3.xpose.msk.msra.mxu1 %vm129_vm0, %v69_v0 }
  0x7c   :  { %2378 = vmatprep.subr.msk.mxu1 %vm129_vm0, %v84_v1 }
  0x7f   :  { %2379 = vmatpush3.xpose.msk.msra.mxu1 %vm129_vm0, %v68_v2 }
  0x80   :  { %2380 = vmatprep.subr.msk.mxu1 %vm129_vm0, %v83_v3 }
  0x83   :  { %2381 = vmatpush3.xpose.msk.msra.mxu1 %vm129_vm0, %v67_v4 }
  0x84   :  { %2382 = vmatprep.subr.msk.mxu1 %vm129_vm0, %v82_v5 }
  0x87   :  { %2383 = vmatpush3.xpose.msk.msra.mxu1 %vm129_vm0, %v66_v6 }
  0x88   :  { %2384 = vmatprep.subr.msk.mxu1 %vm129_vm0, %v81_v7 }
  0x8b   :  { %2385 = vmatpush3.xpose.msk.msra.mxu1 %vm129_vm0, %v65_v9 }
  0x8e   :  { %2387 = vmatmul.mubr.msk.f32.vlgmr.msra.gmra.mxu1 %vm129_vm0, %v2704_v8  ;;  %v2841_v10 = vpop.permute.xlu0 %111 }
  0x8f   :  { %2388 = vmatprep.mubr.msk.f32.mxu1 %vm129_vm0, %v2768_v40  ;;  %v2851_v16 = vpop.permute.xlu1 %121 }
  0x92   :  { %2389 = vmatmul.mubr.msk.f32.gmra.mxu1 %vm129_vm0, %v2768_v40  ;;  %v2843_v12 = vpop.permute.xlu0 %116 }
  0x93   :  { %2390 = vmatprep.mubr.msk.f32.mxu1 %vm129_vm0, %v2779_v43  ;;  %v2859_v28 = vpop.permute.xlu1 %126 }
  0x96   :  { %2391 = vmatmul.mubr.msk.f32.gmra.mxu1 %vm129_vm0, %v2779_v43 }
  0x97   :  { %2392 = vmatprep.mubr.msk.f32.mxu1 %vm129_vm0, %v2790_v46 }
  0x9a   :  { %2393 = vmatmul.mubr.msk.f32.gmra.mxu1 %vm129_vm0, %v2790_v46 }
 0x10e   :  { %v400_v8 = vpop.f32.mrf.mxu1 }
 0x10f   :  { %v401_v20 = vadd.f32 %v400_v8, %v2841_v10 }
 0x110   :  { %v402_v11 = vpop.f32.mrf.mxu1 }
 0x111   :  { %v403_v24 = vadd.f32 %v402_v11, %v2841_v10 }
 0x112   :  { %v406_v13 = vpop.f32.mrf.mxu1 }
 0x113   :  { %v407_v18 = vadd.f32 %v406_v13, %v2843_v12 }
 0x114   :  { %v408_v17 = vpop.f32.mrf.mxu1 }
 0x115   :  { %v409_v21 = vadd.f32 %v408_v17, %v2843_v12  ;;  %v512_v25 = vmin.f32 %v401_v20, %v407_v18 }
 0x116   :  { %v412_v19 = vpop.f32.mrf.mxu1 }
 0x117   :  { %v413_v22 = vadd.f32 %v412_v19, %v2851_v16  ;;  %v521_v32 = vmin.f32 %v403_v24, %v409_v21 }
 0x118   :  { %v414_v23 = vpop.f32.mrf.mxu1 }
 0x119   :  { %v415_v26 = vadd.f32 %v414_v23, %v2851_v16  ;;  %v513_v34 = vmin.f32 %v512_v25, %v413_v22 }
 0x11a   :  { %v418_v30 = vpop.f32.mrf.mxu1 }
 0x11b   :  { %v419_v36 = vadd.f32 %v418_v30, %v2859_v28  ;;  %v522_v39 = vmin.f32 %v521_v32, %v415_v26  ;;  %v2660_v30 = vmov 0.0  }
 0x11c   :  { %v420_v38 = vpop.f32.mrf.mxu1 }
 0x11d   :  { %v514_v40 = vmin.f32 %v513_v34, %v419_v36  ;;  %v421_v41 = vadd.f32 %v420_v38, %v2859_v28 }
 0x11f   :  { %v515_v42 = vrot.slane %v514_v40, 4  ;;  %v523_v43 = vmin.f32 %v522_v39, %v421_v41 }
 0x121   :  { %v516_v45 = vmin.f32 %v514_v40, %v515_v42  ;;  %v524_v46 = vrot.slane %v523_v43, 4 }
 0x123   :  { %v517_v47 = vrot.slane %v516_v45, 2  ;;  %v525_v48 = vmin.f32 %v523_v43, %v524_v46 }
 0x125   :  { %v518_v50 = vmin.f32 %v516_v45, %v517_v47  ;;  %v526_v51 = vrot.slane %v525_v48, 2 }
 0x127   :  { %v519_v52 = vrot.slane %v518_v50, 1  ;;  %v527_v53 = vmin.f32 %v525_v48, %v526_v51 }
 0x129   :  { %v520_v55 = vmin.f32 %v518_v50, %v519_v52  ;;  %v528_v56 = vrot.slane %v527_v53, 1 }
 0x12b   :  { %vm553_vm1 = vcmp.eq.f32.partialorder %v401_v20, %v520_v55  ;;  %vm557_vm2 = vcmp.eq.f32.partialorder %v407_v18, %v520_v55  ;;  %vm561_vm3 = vcmp.eq.f32.partialorder %v413_v22, %v520_v55  ;;  %vm565_vm4 = vcmp.eq.f32.partialorder %v419_v36, %v520_v55 }
 0x12c   :  { %v569_v59 = vsel %vm553_vm1, %v2864_v49, 32  ;;  %v573_v60 = vsel %vm557_vm2, %v2867_v54, 32  ;;  %v529_v61 = vmin.f32 %v527_v53, %v528_v56  ;;  %v577_v62 = vsel %vm561_vm3, %v2870_v57, 32 }
 0x12d   :  { %vm585_vm5 = vcmp.lt.s32.totalorder %v569_v59, %v573_v60  ;;  %v581_v0 = vsel %vm565_vm4, %v2873_v58, 32 }
 0x12e   :  { %v586_v63 = vsel %vm585_vm5, %v569_v59, %v573_v60  ;;  %vm554_vm7 = vcmp.eq.f32.partialorder %v403_v24, %v529_v61  ;;  %vm558_vm8 = vcmp.eq.f32.partialorder %v409_v21, %v529_v61  ;;  %vm562_vm9 = vcmp.eq.f32.partialorder %v415_v26, %v529_v61  ;;  %v106_v24 = vld [vmem:[%s3164_s3 + $0x8] sm:$0xff]  ;;  %v105_v26 = vld [vmem:[%s3164_s3] sm:$0xff] }
 0x12f   :  { %vm587_vm6 = vcmp.lt.s32.totalorder %v586_v63, %v577_v62  ;;  %v570_v2 = vsel %vm554_vm7, %v2864_v49, 32  ;;  %v574_v3 = vsel %vm558_vm8, %v2867_v54, 32  ;;  %vm566_vm11 = vcmp.eq.f32.partialorder %v421_v41, %v529_v61  ;;  %2466 = vmatprep.subr.mxu0 %v106_v24 }
 0x130   :  { %v588_v1 = vsel %vm587_vm6, %v586_v63, %v577_v62  ;;  %vm600_vm12 = vcmp.lt.s32.totalorder %v570_v2, %v574_v3  ;;  %v578_v5 = vsel %vm562_vm9, %v2870_v57, 32  ;;  %v582_v9 = vsel %vm566_vm11, %v2873_v58, 32  ;;  %2467 = vmatpush3.msra.mxu0 %v106_v24 }
 0x131   :  { %vm589_vm10 = vcmp.lt.s32.totalorder %v588_v1, %v581_v0  ;;  %v601_v6 = vsel %vm600_vm12, %v570_v2, %v574_v3  ;;  %2468 = vmatprep.subr.mxu0 %v105_v26 }
 0x132   :  { %v590_v4 = vsel %vm589_vm10, %v588_v1, %v581_v0  ;;  %vm602_vm13 = vcmp.lt.s32.totalorder %v601_v6, %v578_v5  ;;  %2469 = vmatpush3.msra.mxu0 %v105_v26 }
 0x133   :  { %v591_v7 = vrot.slane %v590_v4, 4  ;;  %v603_v8 = vsel %vm602_vm13, %v601_v6, %v578_v5 }
 0x134   :  { %vm604_vm15 = vcmp.lt.s32.totalorder %v603_v8, %v582_v9 }
 0x135   :  { %vm592_vm14 = vcmp.lt.s32.totalorder %v590_v4, %v591_v7  ;;  %v605_v13 = vsel %vm604_vm15, %v603_v8, %v582_v9 }
 0x136   :  { %v593_v11 = vsel %vm592_vm14, %v590_v4, %v591_v7  ;;  %v606_v15 = vrot.slane %v605_v13, 4 }
 0x137   :  { %v594_v14 = vrot.slane %v593_v11, 2 }
 0x138   :  { %vm607_vm2 = vcmp.lt.s32.totalorder %v605_v13, %v606_v15 }
 0x139   :  { %vm595_vm1 = vcmp.lt.s32.totalorder %v593_v11, %v594_v14  ;;  %v608_v18 = vsel %vm607_vm2, %v605_v13, %v606_v15 }
 0x13a   :  { %v596_v17 = vsel %vm595_vm1, %v593_v11, %v594_v14  ;;  %v609_v20 = vrot.slane %v608_v18, 2 }
 0x13b   :  { %v597_v19 = vrot.slane %v596_v17, 1 }
 0x13c   :  { %vm610_vm3 = vcmp.lt.s32.totalorder %v608_v18, %v609_v20 }
 0x13d   :  { %vm598_vm4 = vcmp.lt.s32.totalorder %v596_v17, %v597_v19  ;;  %v611_v21 = vsel %vm610_vm3, %v608_v18, %v609_v20 }
 0x13e   :  { %v599_v22 = vsel %vm598_vm4, %v596_v17, %v597_v19  ;;  %v612_v23 = vrot.slane %v611_v21, 1 }
 0x13f   :  { %vm645_vm5 = vcmp.lt.s32.totalorder %v599_v22, 31 }
 0x140   :  { %v2886_v25 = vsel %vm645_vm5, %v599_v22, 31  ;;  %vm613_vm7 = vcmp.lt.s32.totalorder %v611_v21, %v612_v23 }
 0x141   :  { %vm682_vm6 = vcmp.eq.s32.totalorder %v2864_v49, %v2886_v25  ;;  %v614_v34 = vsel %vm613_vm7, %v611_v21, %v612_v23  ;;  %vm686_vm9 = vcmp.eq.s32.totalorder %v2867_v54, %v2886_v25  ;;  %vm690_vm12 = vcmp.eq.s32.totalorder %v2870_v57, %v2886_v25 }
 0x142   :  { %v2234_v32 = vsel %vm682_vm6, 1.0, %v2660_v30  ;;  %vm647_vm8 = vcmp.lt.s32.totalorder %v614_v34, 31  ;;  %v2238_v40 = vsel %vm686_vm9, 1.0, %v2660_v30  ;;  %v2242_v42 = vsel %vm690_vm12, 1.0, %v2660_v30 }
 0x143   :  { %730 = vxpose.xlu0.b32.start [1/4] (short) %v2234_v32, 128  ;;  %v2896_v36 = vsel %vm647_vm8, %v614_v34, 31  ;;  %vm694_vm14 = vcmp.eq.s32.totalorder %v2873_v58, %v2886_v25 }
 0x144   :  { %vm683_vm10 = vcmp.eq.s32.totalorder %v2864_v49, %v2896_v36  ;;  %v653_v38 = vcombine.low %v2886_v25, %v2896_v36  ;;  %vm687_vm11 = vcmp.eq.s32.totalorder %v2867_v54, %v2896_v36  ;;  %vm691_vm13 = vcmp.eq.s32.totalorder %v2870_v57, %v2896_v36 }
 0x145   :  { %v2235_v39 = vsel %vm683_vm10, 1.0, %v2660_v30  ;;  %v2239_v41 = vsel %vm687_vm11, 1.0, %v2660_v30  ;;  %v2243_v43 = vsel %vm691_vm13, 1.0, %v2660_v30  ;;  %v2246_v46 = vsel %vm694_vm14, 1.0, %v2660_v30 }
 0x146   :  { %762 = vxpose.xlu1.b32.start [1/4] (short) %v2235_v39, 128  ;;  %vm695_vm15 = vcmp.eq.s32.totalorder %v2873_v58, %v2896_v36 }
 0x147   :  { %731 = vxpose.xlu0.b32.cont [2/4] (short) %v2238_v40, 128  ;;  %v2247_v48 = vsel %vm695_vm15, 1.0, %v2660_v30 }
 0x14a   :  { %763 = vxpose.xlu1.b32.cont [2/4] (short) %v2239_v41, 128 }
 0x14b   :  { %732 = vxpose.xlu0.b32.cont [3/4] (short) %v2242_v42, 128 }
 0x14e   :  { %v489_v45 = vpop.f32.mrf.mxu1  ;;  %764 = vxpose.xlu1.b32.cont [3/4] (short) %v2243_v43, 128 }
 0x14f   :  { %733 = vxpose.xlu0.b32.end [4/4] (short) %v2246_v46, 128  ;;  %v490_v55 = vadd.f32 %v489_v45, %v2841_v10 }
 0x150   :  { %v491_v47 = vpop.f32.mrf.mxu1 }
 0x151   :  { %v492_v61 = vadd.f32 %v491_v47, %v2841_v10 }
 0x152   :  { %v495_v50 = vpop.f32.mrf.mxu1  ;;  %765 = vxpose.xlu1.b32.end [4/4] (short) %v2247_v48, 128 }
 0x153   :  { %v496_v52 = vadd.f32 %v495_v50, %v2843_v12 }
 0x154   :  { %v497_v51 = vpop.f32.mrf.mxu1 }
 0x155   :  { %v498_v56 = vadd.f32 %v497_v51, %v2843_v12  ;;  %v530_v62 = vmin.f32 %v490_v55, %v496_v52  ;;  %v2661_v51 = vmov 1966171168  }
 0x156   :  { %v501_v53 = vpop.f32.mrf.mxu1 }
 0x157   :  { %v502_v59 = vadd.f32 %v501_v53, %v2851_v16  ;;  %v539_v1 = vmin.f32 %v492_v61, %v498_v56 }
 0x158   :  { %v503_v60 = vpop.f32.mrf.mxu1 }
 0x159   :  { %v504_v63 = vadd.f32 %v503_v60, %v2851_v16  ;;  %v531_v2 = vmin.f32 %v530_v62, %v502_v59 }
 0x15a   :  { %v507_v0 = vpop.f32.mrf.mxu1 }
 0x15b   :  { %v508_v3 = vadd.f32 %v507_v0, %v2859_v28  ;;  %v540_v5 = vmin.f32 %v539_v1, %v504_v63 }
 0x15c   :  { %v509_v4 = vpop.f32.mrf.mxu1 }
 0x15d   :  { %v532_v6 = vmin.f32 %v531_v2, %v508_v3  ;;  %v510_v7 = vadd.f32 %v509_v4, %v2859_v28 }
 0x15f   :  { %v533_v9 = vrot.slane %v532_v6, 4  ;;  %v541_v12 = vmin.f32 %v540_v5, %v510_v7 }
 0x161   :  { %v534_v8 = vmin.f32 %v532_v6, %v533_v9  ;;  %v542_v11 = vrot.slane %v541_v12, 4 }
 0x163   :  { %v535_v13 = vrot.slane %v534_v8, 2  ;;  %v543_v14 = vmin.f32 %v541_v12, %v542_v11 }
 0x165   :  { %v536_v10 = vmin.f32 %v534_v8, %v535_v13  ;;  %v544_v15 = vrot.slane %v543_v14, 2 }
 0x167   :  { %v537_v17 = vrot.slane %v536_v10, 1  ;;  %v545_v16 = vmin.f32 %v543_v14, %v544_v15 }
 0x169   :  { %v538_v18 = vmin.f32 %v536_v10, %v537_v17  ;;  %v546_v19 = vrot.slane %v545_v16, 1 }
 0x16b   :  { %vm555_vm1 = vcmp.eq.f32.partialorder %v490_v55, %v538_v18  ;;  %vm559_vm2 = vcmp.eq.f32.partialorder %v496_v52, %v538_v18  ;;  %vm563_vm3 = vcmp.eq.f32.partialorder %v502_v59, %v538_v18  ;;  %vm567_vm4 = vcmp.eq.f32.partialorder %v508_v3, %v538_v18 }
 0x16c   :  { %v571_v20 = vsel %vm555_vm1, %v2864_v49, 32  ;;  %v575_v21 = vsel %vm559_vm2, %v2867_v54, 32  ;;  %v547_v28 = vmin.f32 %v545_v16, %v546_v19  ;;  %v579_v22 = vsel %vm563_vm3, %v2870_v57, 32 }
 0x16d   :  { %vm615_vm5 = vcmp.lt.s32.totalorder %v571_v20, %v575_v21  ;;  %v583_v24 = vsel %vm567_vm4, %v2873_v58, 32  ;;  %v656_v52 = vunpack.c.l.s4 %v2661_v51 }
 0x16e   :  { %v616_v23 = vsel %vm615_vm5, %v571_v20, %v575_v21  ;;  %vm556_vm7 = vcmp.eq.f32.partialorder %v492_v61, %v547_v28  ;;  %vm560_vm8 = vcmp.eq.f32.partialorder %v498_v56, %v547_v28  ;;  %vm564_vm9 = vcmp.eq.f32.partialorder %v504_v63, %v547_v28 }
 0x16f   :  { %vm617_vm6 = vcmp.lt.s32.totalorder %v616_v23, %v579_v22  ;;  %v572_v32 = vsel %vm556_vm7, %v2864_v49, 32  ;;  %v576_v34 = vsel %vm560_vm8, %v2867_v54, 32  ;;  %vm568_vm11 = vcmp.eq.f32.partialorder %v510_v7, %v547_v28 }
 0x170   :  { %v618_v26 = vsel %vm617_vm6, %v616_v23, %v579_v22  ;;  %vm630_vm12 = vcmp.lt.s32.totalorder %v572_v32, %v576_v34  ;;  %v580_v40 = vsel %vm564_vm9, %v2870_v57, 32  ;;  %v584_v43 = vsel %vm568_vm11, %v2873_v58, 32 }
 0x171   :  { %vm619_vm10 = vcmp.lt.s32.totalorder %v618_v26, %v583_v24  ;;  %v631_v41 = vsel %vm630_vm12, %v572_v32, %v576_v34  ;;  %v657_v60 = vunpack.c.0.s8 %v656_v52 }
 0x172   :  { %v620_v39 = vsel %vm619_vm10, %v618_v26, %v583_v24  ;;  %vm632_vm13 = vcmp.lt.s32.totalorder %v631_v41, %v580_v40 }
 0x173   :  { %v621_v42 = vrot.slane %v620_v39, 4  ;;  %v633_v45 = vsel %vm632_vm13, %v631_v41, %v580_v40  ;;  %v660_v1 = vsub.s32 %v657_v60, %v2864_v49  ;;  %vm679_vm13 = vcmp.lt.s32.totalorder %v548_v44, 512 }
 0x174   :  { %vm634_vm15 = vcmp.lt.s32.totalorder %v633_v45, %v584_v43 }
 0x175   :  { %vm622_vm14 = vcmp.lt.s32.totalorder %v620_v39, %v621_v42  ;;  %v635_v47 = vsel %vm634_vm15, %v633_v45, %v584_v43  ;;  %v661_v6 = vrot.slane %v653_v38, %v660_v1 }
 0x176   :  { %v623_v46 = vsel %vm622_vm14, %v620_v39, %v621_v42  ;;  %v636_v50 = vrot.slane %v635_v47, 4 }
 0x177   :  { %v624_v48 = vrot.slane %v623_v46, 2 }
 0x178   :  { %vm637_vm2 = vcmp.lt.s32.totalorder %v635_v47, %v636_v50 }
 0x179   :  { %vm625_vm1 = vcmp.lt.s32.totalorder %v623_v46, %v624_v48  ;;  %v638_v55 = vsel %vm637_vm2, %v635_v47, %v636_v50  ;;  %vm858_vm2 = vcmask 261120  }
 0x17a   :  { %v626_v53 = vsel %vm625_vm1, %v623_v46, %v624_v48  ;;  %v639_v59 = vrot.slane %v638_v55, 2 }
 0x17b   :  { %v627_v56 = vrot.slane %v626_v53, 1 }
 0x17c   :  { %vm640_vm3 = vcmp.lt.s32.totalorder %v638_v55, %v639_v59 }
 0x17d   :  { %vm628_vm4 = vcmp.lt.s32.totalorder %v626_v53, %v627_v56  ;;  %v641_v61 = vsel %vm640_vm3, %v638_v55, %v639_v59  ;;  %vm2010_vm3 = vcmask 7168  }
 0x17e   :  { %v629_v62 = vsel %vm628_vm4, %v626_v53, %v627_v56  ;;  %v642_v63 = vrot.slane %v641_v61, 1 }
 0x17f   :  { %vm649_vm5 = vcmp.lt.s32.totalorder %v629_v62, 31 }
 0x180   :  { %v650_v0 = vsel %vm649_vm5, %v629_v62, 31  ;;  %vm643_vm7 = vcmp.lt.s32.totalorder %v641_v61, %v642_v63 }
 0x181   :  { %vm684_vm6 = vcmp.eq.s32.totalorder %v2864_v49, %v650_v0  ;;  %v644_v3 = vsel %vm643_vm7, %v641_v61, %v642_v63  ;;  %vm688_vm9 = vcmp.eq.s32.totalorder %v2867_v54, %v650_v0  ;;  %vm692_vm12 = vcmp.eq.s32.totalorder %v2870_v57, %v650_v0 }
 0x182   :  { %v2236_v2 = vsel %vm684_vm6, 1.0, %v2660_v30  ;;  %vm651_vm8 = vcmp.lt.s32.totalorder %v644_v3, 31  ;;  %v2240_v9 = vsel %vm688_vm9, 1.0, %v2660_v30  ;;  %v2244_v11 = vsel %vm692_vm12, 1.0, %v2660_v30 }
 0x183   :  { %794 = vxpose.xlu0.b32.start [1/4] (short) %v2236_v2, 128  ;;  %v652_v4 = vsel %vm651_vm8, %v644_v3, 31  ;;  %vm696_vm15 = vcmp.eq.s32.totalorder %v2873_v58, %v650_v0 }
 0x184   :  { %v654_v5 = vcombine.low %v650_v0, %v652_v4  ;;  %vm685_vm10 = vcmp.eq.s32.totalorder %v2864_v49, %v652_v4  ;;  %vm689_vm11 = vcmp.eq.s32.totalorder %v2867_v54, %v652_v4  ;;  %vm693_vm14 = vcmp.eq.s32.totalorder %v2870_v57, %v652_v4 }
 0x185   :  { %v2237_v7 = vsel %vm685_vm10, 1.0, %v2660_v30  ;;  %v2241_v49 = vsel %vm689_vm11, 1.0, %v2660_v30  ;;  %v2245_v54 = vsel %vm693_vm14, 1.0, %v2660_v30  ;;  %v2248_v36 = vsel %vm696_vm15, 1.0, %v2660_v30 }
 0x186   :  { %v668_v12 = vrot.slane %v654_v5, %v660_v1  ;;  %826 = vxpose.xlu1.b32.start [1/4] (short) %v2237_v7, 128  ;;  %vm697_vm1 = vcmp.eq.s32.totalorder %v2873_v58, %v652_v4 }
 0x187   :  { %795 = vxpose.xlu0.b32.cont [2/4] (short) %v2240_v9, 128  ;;  %v2249_v38 = vsel %vm697_vm1, 1.0, %v2660_v30 }
 0x188   :  { %v669_v8 = vcombine.low %v661_v6, %v668_v12 }
 0x18a   :  { %v676_v25 = vrot.slane %v669_v8, %v660_v1  ;;  %827 = vxpose.xlu1.b32.cont [2/4] (short) %v2241_v49, 128 }
 0x18b   :  { %796 = vxpose.xlu0.b32.cont [3/4] (short) %v2244_v11, 128 }
 0x18c   :  { %681 = vst.msk [vmem:[%s3165_s4] sm:$0xf] %vm679_vm13, %v676_v25 }
 0x18e   :  { %828 = vxpose.xlu1.b32.cont [3/4] (short) %v2245_v54, 128 }
 0x18f   :  { %797 = vxpose.xlu0.b32.end [4/4] (short) %v2248_v36, 128 }
 0x192   :  { %829 = vxpose.xlu1.b32.end [4/4] (short) %v2249_v38, 128 }
 0x1bf   :  { %v746_v13 = vpop.trf.xlu0 }
 0x1c0   :  { %2470 = vmatprep.mubr.msk.f32.mxu0 %vm858_vm2, %v746_v13 }
 0x1c2   :  { %v778_v14 = vpop.trf.xlu1 }
 0x1c3   :  { %v747_v57 = vpop.trf.xlu0 }
 0x1c4   :  { %2471 = vmatmul.mubr.msk.f32.vlgmr.msra.gmra.mxu0 %vm858_vm2, %v747_v57 }
 0x1c6   :  { %v779_v15 = vpop.trf.xlu1 }
 0x1c7   :  { %v748_v10 = vpop.trf.xlu0 }
 0x1c8   :  { %2473 = vmatprep.mubr.msk.f32.mxu0 %vm858_vm2, %v748_v10 }
 0x1ca   :  { %v780_v16 = vpop.trf.xlu1 }
 0x1cb   :  { %v749_v17 = vpop.trf.xlu0 }
 0x1cc   :  { %2474 = vmatmul.mubr.msk.f32.gmra.mxu0 %vm858_vm2, %v749_v17 }
 0x1ce   :  { %v781_v18 = vpop.trf.xlu1 }
 0x1cf   :  { %v750_v58 = vpop.trf.xlu0 }
 0x1d0   :  { %2476 = vmatprep.mubr.msk.f32.mxu0 %vm858_vm2, %v750_v58 }
 0x1d2   :  { %v782_v19 = vpop.trf.xlu1 }
 0x1d3   :  { %v751_v30 = vpop.trf.xlu0 }
 0x1d4   :  { %2477 = vmatmul.mubr.msk.f32.gmra.mxu0 %vm858_vm2, %v751_v30 }
 0x1d6   :  { %v783_v21 = vpop.trf.xlu1 }
 0x1d7   :  { %v752_v20 = vpop.trf.xlu0 }
 0x1d8   :  { %2479 = vmatprep.mubr.msk.f32.mxu0 %vm858_vm2, %v752_v20 }
 0x1da   :  { %v784_v22 = vpop.trf.xlu1 }
 0x1db   :  { %v753_v28 = vpop.trf.xlu0 }
 0x1dc   :  { %2480 = vmatmul.mubr.msk.f32.gmra.mxu0 %vm858_vm2, %v753_v28 }
 0x1de   :  { %v785_v24 = vpop.trf.xlu1 }
 0x1df   :  { %v754_v23 = vpop.trf.xlu0 }
 0x1e0   :  { %2482 = vmatprep.mubr.msk.f32.mxu0 %vm858_vm2, %v754_v23 }
 0x1e2   :  { %v786_v32 = vpop.trf.xlu1 }
 0x1e3   :  { %v755_v26 = vpop.trf.xlu0 }
 0x1e4   :  { %2483 = vmatmul.mubr.msk.f32.gmra.mxu0 %vm858_vm2, %v755_v26 }
 0x1e6   :  { %v787_v39 = vpop.trf.xlu1 }
 0x1e7   :  { %v756_v34 = vpop.trf.xlu0 }
 0x1e8   :  { %2485 = vmatprep.mubr.msk.f32.mxu0 %vm858_vm2, %v756_v34 }
 0x1ea   :  { %v788_v41 = vpop.trf.xlu1 }
 0x1eb   :  { %v757_v40 = vpop.trf.xlu0 }
 0x1ec   :  { %2486 = vmatmul.mubr.msk.f32.gmra.mxu0 %vm858_vm2, %v757_v40 }
 0x1ee   :  { %v789_v43 = vpop.trf.xlu1 }
 0x1ef   :  { %v758_v42 = vpop.trf.xlu0 }
 0x1f0   :  { %2488 = vmatprep.mubr.msk.f32.mxu0 %vm858_vm2, %v758_v42 }
 0x1f2   :  { %v790_v46 = vpop.trf.xlu1 }
 0x1f3   :  { %v759_v45 = vpop.trf.xlu0 }
 0x1f4   :  { %2489 = vmatmul.mubr.msk.f32.gmra.mxu0 %vm858_vm2, %v759_v45 }
 0x1f6   :  { %v791_v48 = vpop.trf.xlu1 }
 0x1f7   :  { %v760_v47 = vpop.trf.xlu0 }
 0x1f8   :  { %2491 = vmatprep.mubr.msk.f32.mxu0 %vm858_vm2, %v760_v47 }
 0x1fa   :  { %v792_v51 = vpop.trf.xlu1 }
 0x1fb   :  { %v761_v50 = vpop.trf.xlu0 }
 0x1fc   :  { %2492 = vmatmul.mubr.msk.f32.gmra.mxu0 %vm858_vm2, %v761_v50 }
 0x1fd   :  { %2494 = vmatprep.mubr.msk.f32.mxu0 %vm858_vm2, %v778_v14 }
 0x1fe   :  { %v793_v53 = vpop.trf.xlu1 }
 0x1ff   :  { %v810_v52 = vpop.trf.xlu0 }
 0x200   :  { %2495 = vmatmul.mubr.msk.f32.gmra.mxu0 %vm858_vm2, %v779_v15 }
 0x201   :  { %2497 = vmatprep.mubr.msk.f32.mxu0 %vm858_vm2, %v780_v16 }
 0x202   :  { %v842_v56 = vpop.trf.xlu1 }
 0x203   :  { %v811_v55 = vpop.trf.xlu0 }
 0x204   :  { %2498 = vmatmul.mubr.msk.f32.gmra.mxu0 %vm858_vm2, %v781_v18 }
 0x205   :  { %2500 = vmatprep.mubr.msk.f32.mxu0 %vm858_vm2, %v782_v19 }
 0x206   :  { %v843_v60 = vpop.trf.xlu1 }
 0x207   :  { %v812_v59 = vpop.trf.xlu0 }
 0x208   :  { %2501 = vmatmul.mubr.msk.f32.gmra.mxu0 %vm858_vm2, %v783_v21 }
 0x209   :  { %2503 = vmatprep.mubr.msk.f32.mxu0 %vm858_vm2, %v784_v22 }
 0x20a   :  { %v844_v62 = vpop.trf.xlu1 }
 0x20b   :  { %v813_v61 = vpop.trf.xlu0 }
 0x20c   :  { %2504 = vmatmul.mubr.msk.f32.gmra.mxu0 %vm858_vm2, %v785_v24 }
 0x20d   :  { %2506 = vmatprep.mubr.msk.f32.mxu0 %vm858_vm2, %v786_v32 }
 0x20e   :  { %v845_v0 = vpop.trf.xlu1 }
 0x20f   :  { %v814_v63 = vpop.trf.xlu0 }
 0x210   :  { %2507 = vmatmul.mubr.msk.f32.gmra.mxu0 %vm858_vm2, %v787_v39 }
 0x211   :  { %2509 = vmatprep.mubr.msk.f32.mxu0 %vm858_vm2, %v788_v41 }
 0x212   :  { %v846_v3 = vpop.trf.xlu1 }
 0x213   :  { %v815_v1 = vpop.trf.xlu0 }
 0x214   :  { %2510 = vmatmul.mubr.msk.f32.gmra.mxu0 %vm858_vm2, %v789_v43 }
 0x215   :  { %2512 = vmatprep.mubr.msk.f32.mxu0 %vm858_vm2, %v790_v46 }
 0x216   :  { %v847_v5 = vpop.trf.xlu1 }
 0x217   :  { %v816_v2 = vpop.trf.xlu0 }
 0x218   :  { %2513 = vmatmul.mubr.msk.f32.gmra.mxu0 %vm858_vm2, %v791_v48  ;;  %v2576_v48 = vld [vmem:[#allocation2 + $0x38] sm:$0xff] }
 0x219   :  { %2515 = vmatprep.mubr.msk.f32.mxu0 %vm858_vm2, %v792_v51 }
 0x21a   :  { %v848_v9 = vpop.trf.xlu1 }
 0x21b   :  { %v817_v4 = vpop.trf.xlu0 }
 0x21c   :  { %2516 = vmatmul.mubr.msk.f32.gmra.mxu0 %vm858_vm2, %v793_v53 }
 0x21d   :  { %2518 = vmatprep.mubr.msk.f32.mxu0 %vm858_vm2, %v810_v52 }
 0x21e   :  { %v849_v8 = vpop.trf.xlu1 }
 0x21f   :  { %v818_v6 = vpop.trf.xlu0 }
 0x220   :  { %2519 = vmatmul.mubr.msk.f32.gmra.mxu0 %vm858_vm2, %v811_v55 }
 0x221   :  { %2521 = vmatprep.mubr.msk.f32.mxu0 %vm858_vm2, %v812_v59 }
 0x222   :  { %v850_v25 = vpop.trf.xlu1 }
 0x223   :  { %v819_v7 = vpop.trf.xlu0 }
 0x224   :  { %2522 = vmatmul.mubr.msk.f32.gmra.mxu0 %vm858_vm2, %v813_v61 }
 0x225   :  { %2524 = vmatprep.mubr.msk.f32.mxu0 %vm858_vm2, %v814_v63 }
 0x226   :  { %v851_v36 = vpop.trf.xlu1 }
 0x227   :  { %v820_v12 = vpop.trf.xlu0 }
 0x228   :  { %2525 = vmatmul.mubr.msk.f32.gmra.mxu0 %vm858_vm2, %v815_v1 }
 0x229   :  { %2527 = vmatprep.mubr.msk.f32.mxu0 %vm858_vm2, %v816_v2 }
 0x22a   :  { %v852_v57 = vpop.trf.xlu1 }
 0x22b   :  { %v821_v49 = vpop.trf.xlu0 }
 0x22c   :  { %2528 = vmatmul.mubr.msk.f32.gmra.mxu0 %vm858_vm2, %v817_v4 }
 0x22d   :  { %2530 = vmatprep.mubr.msk.f32.mxu0 %vm858_vm2, %v818_v6  ;;  %v2580_v6 = vld [vmem:[#allocation2 + $0x58] sm:$0xff] }
 0x22e   :  { %v853_v14 = vpop.trf.xlu1 }
 0x22f   :  { %v822_v11 = vpop.trf.xlu0 }
 0x230   :  { %2531 = vmatmul.mubr.msk.f32.gmra.mxu0 %vm858_vm2, %v819_v7 }
 0x231   :  { %2533 = vmatprep.mubr.msk.f32.mxu0 %vm858_vm2, %v820_v12 }
 0x232   :  { %v854_v10 = vpop.trf.xlu1 }
 0x233   :  { %v823_v54 = vpop.trf.xlu0 }
 0x234   :  { %2534 = vmatmul.mubr.msk.f32.gmra.mxu0 %vm858_vm2, %v821_v49 }
 0x235   :  { %2536 = vmatprep.mubr.msk.f32.mxu0 %vm858_vm2, %v822_v11 }
 0x236   :  { %v855_v15 = vpop.trf.xlu1 }
 0x237   :  { %v824_v38 = vpop.trf.xlu0 }
 0x238   :  { %2537 = vmatmul.mubr.msk.f32.gmra.mxu0 %vm858_vm2, %v823_v54 }
 0x239   :  { %2539 = vmatprep.mubr.msk.f32.mxu0 %vm858_vm2, %v824_v38  ;;  %v2582_v38 = vld [vmem:[#allocation2 + $0x68] sm:$0xff] }
 0x23a   :  { %v856_v17 = vpop.trf.xlu1 }
 0x23b   :  { %v825_v13 = vpop.trf.xlu0 }
 0x23c   :  { %2540 = vmatmul.mubr.msk.f32.gmra.mxu0 %vm858_vm2, %v825_v13 }
 0x23d   :  { %2542 = vmatprep.mubr.msk.f32.mxu0 %vm858_vm2, %v842_v56 }
 0x23e   :  { %v857_v16 = vpop.trf.xlu1 }
 0x240   :  { %2543 = vmatmul.mubr.msk.f32.gmra.mxu0 %vm858_vm2, %v843_v60  ;;  %v2578_v60 = vld [vmem:[#allocation2 + $0x48] sm:$0xff] }
 0x241   :  { %2545 = vmatprep.mubr.msk.f32.mxu0 %vm858_vm2, %v844_v62 }
 0x244   :  { %2546 = vmatmul.mubr.msk.f32.gmra.mxu0 %vm858_vm2, %v845_v0  ;;  %v2579_v0 = vld [vmem:[#allocation2 + $0x40] sm:$0xff] }
 0x245   :  { %2548 = vmatprep.mubr.msk.f32.mxu0 %vm858_vm2, %v846_v3 }
 0x248   :  { %2549 = vmatmul.mubr.msk.f32.gmra.mxu0 %vm858_vm2, %v847_v5 }
 0x249   :  { %2551 = vmatprep.mubr.msk.f32.mxu0 %vm858_vm2, %v848_v9 }
 0x24c   :  { %2552 = vmatmul.mubr.msk.f32.gmra.mxu0 %vm858_vm2, %v849_v8  ;;  %v2581_v8 = vld [vmem:[#allocation2 + $0x50] sm:$0xff] }
 0x24d   :  { %2554 = vmatprep.mubr.msk.f32.mxu0 %vm858_vm2, %v850_v25 }
 0x250   :  { %2555 = vmatmul.mubr.msk.f32.gmra.mxu0 %vm858_vm2, %v851_v36 }
 0x251   :  { %2557 = vmatprep.mubr.msk.f32.mxu0 %vm858_vm2, %v852_v57 }
 0x254   :  { %2558 = vmatmul.mubr.msk.f32.gmra.mxu0 %vm858_vm2, %v853_v14 }
 0x255   :  { %2560 = vmatprep.mubr.msk.f32.mxu0 %vm858_vm2, %v854_v10  ;;  %v2583_v10 = vld [vmem:[#allocation2 + $0x60] sm:$0xff] }
 0x258   :  { %2561 = vmatmul.mubr.msk.f32.gmra.mxu0 %vm858_vm2, %v855_v15 }
 0x259   :  { %2563 = vmatprep.mubr.msk.f32.mxu0 %vm858_vm2, %v856_v17 }
 0x25c   :  { %2564 = vmatmul.mubr.msk.f32.gmra.mxu0 %vm858_vm2, %v857_v16 }
 0x284   :  { %v2472_v58 = vpop.f32.mrf.mxu0 }
 0x285   :  { %v1437_v18 = vsub.f32 %v2472_v58, %v2755_v35 }
 0x286   :  { %v1117_v30 = vpop.f32.mrf.mxu0 }
 0x287   :  { %v1501_v19 = vmul.f32 %v1437_v18, %v1437_v18  ;;  %v1436_v20 = vsub.f32 %v1117_v30, %v2760_v37  ;;  %v2584_v30 = vld [vmem:[#allocation2 + $0x78] sm:$0xff] }
 0x289   :  { %v1500_v21 = vmul.f32 %v1436_v20, %v1436_v20  ;;  %v1567_v28 = vsel %vm129_vm0, %v1501_v19, 0.0 }
 0x28a   :  { %1568 = vadd.xlane.f32.xlu1 %v1567_v28  ;;  %v2585_v28 = vld [vmem:[#allocation2 + $0x70] sm:$0xff] }
 0x28b   :  { %v1564_v22 = vsel %vm129_vm0, %v1500_v21, 0.0 }
 0x28c   :  { %1565 = vadd.xlane.f32.xlu0 %v1564_v22  ;;  %v2475_v23 = vpop.f32.mrf.mxu0 }
 0x28d   :  { %v1439_v26 = vsub.f32 %v2475_v23, %v2745_v31 }
 0x28e   :  { %v1127_v24 = vpop.f32.mrf.mxu0 }
 0x28f   :  { %v1438_v32 = vsub.f32 %v1127_v24, %v2750_v33  ;;  %v1503_v39 = vmul.f32 %v1439_v26, %v1439_v26  ;;  %v2586_v26 = vld [vmem:[#allocation2 + $0x88] sm:$0xff] }
 0x291   :  { %v1502_v34 = vmul.f32 %v1438_v32, %v1438_v32  ;;  %v1573_v45 = vsel %vm129_vm0, %v1503_v39, 0.0 }
 0x293   :  { %v1570_v35 = vsel %vm129_vm0, %v1502_v34, 0.0 }
 0x294   :  { %1571 = vadd.xlane.f32.xlu0 %v1570_v35  ;;  %v2478_v40 = vpop.f32.mrf.mxu0 }
 0x295   :  { %v1441_v37 = vsub.f32 %v2478_v40, %v2735_v27  ;;  %v2577_v27 = vld [vmem:[#allocation2 + $0x30] sm:$0xff]  ;;  %v2587_v40 = vld [vmem:[#allocation2 + $0x80] sm:$0xff] }
 0x296   :  { %v1137_v41 = vpop.f32.mrf.mxu0 }
 0x297   :  { %v1505_v42 = vmul.f32 %v1441_v37, %v1441_v37  ;;  %v1440_v43 = vsub.f32 %v1137_v41, %v2740_v29 }
 0x298   :  { %1574 = vadd.xlane.f32.xlu0 %v1573_v45  ;;  %v2588_v45 = vld [vmem:[#allocation2 + $0x98] sm:$0xff] }
 0x299   :  { %v1504_v46 = vmul.f32 %v1440_v43, %v1440_v43  ;;  %v1579_v31 = vsel %vm129_vm0, %v1505_v42, 0.0 }
 0x29b   :  { %v1576_v33 = vsel %vm129_vm0, %v1504_v46, 0.0 }
 0x29c   :  { %1580 = vadd.xlane.f32.xlu0 %v1579_v31  ;;  %1577 = vadd.xlane.f32.xlu1 %v1576_v33  ;;  %v2481_v47 = vpop.f32.mrf.mxu0 }
 0x29d   :  { %v1443_v50 = vsub.f32 %v2481_v47, %v2576_v48  ;;  %v2589_v48 = vld [vmem:[#allocation2 + $0x90] sm:$0xff] }
 0x29e   :  { %v1147_v51 = vpop.f32.mrf.mxu0 }
 0x29f   :  { %v1507_v52 = vmul.f32 %v1443_v50, %v1443_v50  ;;  %v1442_v53 = vsub.f32 %v1147_v51, %v2577_v27 }
 0x2a1   :  { %v1506_v55 = vmul.f32 %v1442_v53, %v1442_v53  ;;  %v1585_v29 = vsel %vm129_vm0, %v1507_v52, 0.0  ;;  %v2590_v53 = vld [vmem:[#allocation2 + $0xa8] sm:$0xff] }
 0x2a2   :  { %1586 = vadd.xlane.f32.xlu0 %v1585_v29 }
 0x2a3   :  { %v1582_v56 = vsel %vm129_vm0, %v1506_v55, 0.0 }
 0x2a4   :  { %1583 = vadd.xlane.f32.xlu1 %v1582_v56  ;;  %v2484_v59 = vpop.f32.mrf.mxu0 }
 0x2a5   :  { %v1445_v61 = vsub.f32 %v2484_v59, %v2578_v60  ;;  %v2591_v60 = vld [vmem:[#allocation2 + $0xa0] sm:$0xff] }
 0x2a6   :  { %v1157_v62 = vpop.f32.mrf.mxu0 }
 0x2a7   :  { %v1509_v63 = vmul.f32 %v1445_v61, %v1445_v61  ;;  %v1444_v1 = vsub.f32 %v1157_v62, %v2579_v0 }
 0x2a9   :  { %v1508_v2 = vmul.f32 %v1444_v1, %v1444_v1  ;;  %v1591_v3 = vsel %vm129_vm0, %v1509_v63, 0.0  ;;  %v2592_v1 = vld [vmem:[#allocation2 + $0xb8] sm:$0xff] }
 0x2aa   :  { %1592 = vadd.xlane.f32.xlu0 %v1591_v3 }
 0x2ab   :  { %v1588_v4 = vsel %vm129_vm0, %v1508_v2, 0.0 }
 0x2ac   :  { %1589 = vadd.xlane.f32.xlu1 %v1588_v4  ;;  %v2487_v5 = vpop.f32.mrf.mxu0 }
 0x2ad   :  { %v1447_v7 = vsub.f32 %v2487_v5, %v2580_v6  ;;  %v2593_v6 = vld [vmem:[#allocation2 + $0xb0] sm:$0xff] }
 0x2ae   :  { %v1167_v9 = vpop.f32.mrf.mxu0 }
 0x2af   :  { %v1511_v12 = vmul.f32 %v1447_v7, %v1447_v7  ;;  %v1446_v49 = vsub.f32 %v1167_v9, %v2581_v8 }
 0x2b1   :  { %v1510_v11 = vmul.f32 %v1446_v49, %v1446_v49  ;;  %v1597_v25 = vsel %vm129_vm0, %v1511_v12, 0.0  ;;  %v2594_v49 = vld [vmem:[#allocation2 + $0xc8] sm:$0xff] }
 0x2b2   :  { %1598 = vadd.xlane.f32.xlu0 %v1597_v25 }
 0x2b3   :  { %v1594_v54 = vsel %vm129_vm0, %v1510_v11, 0.0 }
 0x2b4   :  { %1595 = vadd.xlane.f32.xlu1 %v1594_v54  ;;  %v2490_v36 = vpop.f32.mrf.mxu0 }
 0x2b5   :  { %v1449_v13 = vsub.f32 %v2490_v36, %v2582_v38  ;;  %v2595_v38 = vld [vmem:[#allocation2 + $0xc0] sm:$0xff] }
 0x2b6   :  { %v1177_v57 = vpop.f32.mrf.mxu0 }
 0x2b7   :  { %v1513_v14 = vmul.f32 %v1449_v13, %v1449_v13  ;;  %v1448_v15 = vsub.f32 %v1177_v57, %v2583_v10 }
 0x2b9   :  { %v1512_v17 = vmul.f32 %v1448_v15, %v1448_v15  ;;  %v1603_v16 = vsel %vm129_vm0, %v1513_v14, 0.0  ;;  %v2596_v15 = vld [vmem:[#allocation2 + $0xd8] sm:$0xff] }
 0x2ba   :  { %1604 = vadd.xlane.f32.xlu0 %v1603_v16 }
 0x2bb   :  { %v1600_v58 = vsel %vm129_vm0, %v1512_v17, 0.0 }
 0x2bc   :  { %1601 = vadd.xlane.f32.xlu1 %v1600_v58  ;;  %v2493_v18 = vpop.f32.mrf.mxu0 }
 0x2bd   :  { %v1451_v19 = vsub.f32 %v2493_v18, %v2584_v30  ;;  %v2597_v30 = vld [vmem:[#allocation2 + $0xd0] sm:$0xff] }
 0x2be   :  { %v1187_v20 = vpop.f32.mrf.mxu0 }
 0x2bf   :  { %v1515_v21 = vmul.f32 %v1451_v19, %v1451_v19  ;;  %v1450_v22 = vsub.f32 %v1187_v20, %v2585_v28 }
 0x2c0   :  { %v2496_v23 = vpop.f32.mrf.mxu0 }
 0x2c1   :  { %v1514_v24 = vmul.f32 %v1450_v22, %v1450_v22  ;;  %v1453_v32 = vsub.f32 %v2496_v23, %v2586_v26  ;;  %v1609_v34 = vsel %vm129_vm0, %v1515_v21, 0.0  ;;  %v2598_v22 = vld [vmem:[#allocation2 + $0xe8] sm:$0xff] }
 0x2c2   :  { %1610 = vadd.xlane.f32.xlu0 %v1609_v34  ;;  %v1197_v39 = vpop.f32.mrf.mxu0  ;;  %v2599_v34 = vld [vmem:[#allocation2 + $0xe0] sm:$0xff] }
 0x2c3   :  { %v1517_v35 = vmul.f32 %v1453_v32, %v1453_v32  ;;  %v1452_v37 = vsub.f32 %v1197_v39, %v2587_v40  ;;  %v1606_v41 = vsel %vm129_vm0, %v1514_v24, 0.0 }
 0x2c4   :  { %1607 = vadd.xlane.f32.xlu1 %v1606_v41  ;;  %v2499_v42 = vpop.f32.mrf.mxu0  ;;  %v2600_v41 = vld [vmem:[#allocation2 + $0xf8] sm:$0xff] }
 0x2c5   :  { %v1516_v43 = vmul.f32 %v1452_v37, %v1452_v37  ;;  %v1455_v46 = vsub.f32 %v2499_v42, %v2588_v45  ;;  %v1615_v31 = vsel %vm129_vm0, %v1517_v35, 0.0 }
 0x2c6   :  { %1616 = vadd.xlane.f32.xlu0 %v1615_v31  ;;  %v1207_v33 = vpop.f32.mrf.mxu0  ;;  %v2601_v31 = vld [vmem:[#allocation2 + $0xf0] sm:$0xff] }
 0x2c7   :  { %v1519_v47 = vmul.f32 %v1455_v46, %v1455_v46  ;;  %v1454_v50 = vsub.f32 %v1207_v33, %v2589_v48  ;;  %v1612_v51 = vsel %vm129_vm0, %v1516_v43, 0.0 }
 0x2c8   :  { %1613 = vadd.xlane.f32.xlu1 %v1612_v51  ;;  %v2502_v52 = vpop.f32.mrf.mxu0  ;;  %v2602_v51 = vld [vmem:[#allocation2 + $0x108] sm:$0xff] }
 0x2c9   :  { %v1518_v27 = vmul.f32 %v1454_v50, %v1454_v50  ;;  %v1457_v55 = vsub.f32 %v2502_v52, %v2590_v53  ;;  %v1621_v29 = vsel %vm129_vm0, %v1519_v47, 0.0 }
 0x2ca   :  { %1622 = vadd.xlane.f32.xlu0 %v1621_v29  ;;  %v1217_v56 = vpop.f32.mrf.mxu0  ;;  %v2603_v29 = vld [vmem:[#allocation2 + $0x100] sm:$0xff] }
 0x2cb   :  { %v1521_v59 = vmul.f32 %v1457_v55, %v1457_v55  ;;  %v1456_v61 = vsub.f32 %v1217_v56, %v2591_v60  ;;  %v1618_v62 = vsel %vm129_vm0, %v1518_v27, 0.0 }
 0x2cc   :  { %1619 = vadd.xlane.f32.xlu1 %v1618_v62  ;;  %v2505_v63 = vpop.f32.mrf.mxu0  ;;  %v2604_v62 = vld [vmem:[#allocation2 + $0x118] sm:$0xff] }
 0x2cd   :  { %v1520_v0 = vmul.f32 %v1456_v61, %v1456_v61  ;;  %v1459_v2 = vsub.f32 %v2505_v63, %v2592_v1  ;;  %v1627_v3 = vsel %vm129_vm0, %v1521_v59, 0.0 }
 0x2ce   :  { %1628 = vadd.xlane.f32.xlu0 %v1627_v3  ;;  %v1227_v4 = vpop.f32.mrf.mxu0  ;;  %v2605_v3 = vld [vmem:[#allocation2 + $0x110] sm:$0xff] }
 0x2cf   :  { %v1523_v5 = vmul.f32 %v1459_v2, %v1459_v2  ;;  %v1458_v7 = vsub.f32 %v1227_v4, %v2593_v6  ;;  %v1624_v9 = vsel %vm129_vm0, %v1520_v0, 0.0 }
 0x2d0   :  { %1625 = vadd.xlane.f32.xlu1 %v1624_v9  ;;  %v2508_v12 = vpop.f32.mrf.mxu0  ;;  %v2606_v9 = vld [vmem:[#allocation2 + $0x128] sm:$0xff] }
 0x2d1   :  { %v1522_v8 = vmul.f32 %v1458_v7, %v1458_v7  ;;  %v1461_v11 = vsub.f32 %v2508_v12, %v2594_v49  ;;  %v1633_v25 = vsel %vm129_vm0, %v1523_v5, 0.0 }
 0x2d2   :  { %1634 = vadd.xlane.f32.xlu0 %v1633_v25  ;;  %v1237_v54 = vpop.f32.mrf.mxu0  ;;  %v2607_v25 = vld [vmem:[#allocation2 + $0x120] sm:$0xff] }
 0x2d3   :  { %v1525_v36 = vmul.f32 %v1461_v11, %v1461_v11  ;;  %v1460_v13 = vsub.f32 %v1237_v54, %v2595_v38  ;;  %v1630_v57 = vsel %vm129_vm0, %v1522_v8, 0.0 }
 0x2d4   :  { %1631 = vadd.xlane.f32.xlu1 %v1630_v57  ;;  %v2511_v14 = vpop.f32.mrf.mxu0  ;;  %v2608_v57 = vld [vmem:[#allocation2 + $0x138] sm:$0xff] }
 0x2d5   :  { %v1524_v10 = vmul.f32 %v1460_v13, %v1460_v13  ;;  %v1463_v17 = vsub.f32 %v2511_v14, %v2596_v15  ;;  %v1639_v16 = vsel %vm129_vm0, %v1525_v36, 0.0 }
 0x2d6   :  { %1640 = vadd.xlane.f32.xlu0 %v1639_v16  ;;  %v1247_v58 = vpop.f32.mrf.mxu0  ;;  %v2609_v16 = vld [vmem:[#allocation2 + $0x130] sm:$0xff] }
 0x2d7   :  { %v1527_v18 = vmul.f32 %v1463_v17, %v1463_v17  ;;  %v1462_v19 = vsub.f32 %v1247_v58, %v2597_v30  ;;  %v1636_v20 = vsel %vm129_vm0, %v1524_v10, 0.0 }
 0x2d8   :  { %1637 = vadd.xlane.f32.xlu1 %v1636_v20  ;;  %v2514_v21 = vpop.f32.mrf.mxu0  ;;  %v2610_v20 = vld [vmem:[#allocation2 + $0x148] sm:$0xff] }
 0x2d9   :  { %v1526_v28 = vmul.f32 %v1462_v19, %v1462_v19  ;;  %v1465_v23 = vsub.f32 %v2514_v21, %v2598_v22  ;;  %v1645_v24 = vsel %vm129_vm0, %v1527_v18, 0.0 }
 0x2da   :  { %1646 = vadd.xlane.f32.xlu0 %v1645_v24  ;;  %v1257_v26 = vpop.f32.mrf.mxu0  ;;  %v2611_v24 = vld [vmem:[#allocation2 + $0x140] sm:$0xff] }
 0x2db   :  { %v1529_v32 = vmul.f32 %v1465_v23, %v1465_v23  ;;  %v1464_v39 = vsub.f32 %v1257_v26, %v2599_v34  ;;  %v1642_v35 = vsel %vm129_vm0, %v1526_v28, 0.0 }
 0x2dc   :  { %1643 = vadd.xlane.f32.xlu1 %v1642_v35  ;;  %v2517_v40 = vpop.f32.mrf.mxu0  ;;  %v2612_v35 = vld [vmem:[#allocation2 + $0x158] sm:$0xff] }
 0x2dd   :  { %v1528_v37 = vmul.f32 %v1464_v39, %v1464_v39  ;;  %v1467_v42 = vsub.f32 %v2517_v40, %v2600_v41  ;;  %v1651_v43 = vsel %vm129_vm0, %v1529_v32, 0.0 }
 0x2de   :  { %1652 = vadd.xlane.f32.xlu0 %v1651_v43  ;;  %v1267_v45 = vpop.f32.mrf.mxu0  ;;  %v2613_v43 = vld [vmem:[#allocation2 + $0x150] sm:$0xff] }
 0x2df   :  { %v1531_v46 = vmul.f32 %v1467_v42, %v1467_v42  ;;  %v1466_v33 = vsub.f32 %v1267_v45, %v2601_v31  ;;  %v1648_v47 = vsel %vm129_vm0, %v1528_v37, 0.0 }
 0x2e0   :  { %1649 = vadd.xlane.f32.xlu1 %v1648_v47  ;;  %v2520_v48 = vpop.f32.mrf.mxu0  ;;  %v2614_v47 = vld [vmem:[#allocation2 + $0x168] sm:$0xff] }
 0x2e1   :  { %v1530_v50 = vmul.f32 %v1466_v33, %v1466_v33  ;;  %v1469_v52 = vsub.f32 %v2520_v48, %v2602_v51  ;;  %v1657_v27 = vsel %vm129_vm0, %v1531_v46, 0.0 }
 0x2e2   :  { %1658 = vadd.xlane.f32.xlu0 %v1657_v27  ;;  %v1277_v53 = vpop.f32.mrf.mxu0  ;;  %v2615_v27 = vld [vmem:[#allocation2 + $0x160] sm:$0xff] }
 0x2e3   :  { %v1533_v55 = vmul.f32 %v1469_v52, %v1469_v52  ;;  %v1468_v56 = vsub.f32 %v1277_v53, %v2603_v29  ;;  %v1654_v59 = vsel %vm129_vm0, %v1530_v50, 0.0 }
 0x2e4   :  { %1655 = vadd.xlane.f32.xlu1 %v1654_v59  ;;  %v2523_v60 = vpop.f32.mrf.mxu0  ;;  %v2616_v59 = vld [vmem:[#allocation2 + $0x178] sm:$0xff] }
 0x2e5   :  { %v1532_v61 = vmul.f32 %v1468_v56, %v1468_v56  ;;  %v1471_v63 = vsub.f32 %v2523_v60, %v2604_v62  ;;  %v1663_v0 = vsel %vm129_vm0, %v1533_v55, 0.0 }
 0x2e6   :  { %1664 = vadd.xlane.f32.xlu0 %v1663_v0  ;;  %v1287_v1 = vpop.f32.mrf.mxu0  ;;  %v2617_v0 = vld [vmem:[#allocation2 + $0x170] sm:$0xff] }
 0x2e7   :  { %v1535_v2 = vmul.f32 %v1471_v63, %v1471_v63  ;;  %v1470_v4 = vsub.f32 %v1287_v1, %v2605_v3  ;;  %v1660_v5 = vsel %vm129_vm0, %v1532_v61, 0.0 }
 0x2e8   :  { %1661 = vadd.xlane.f32.xlu1 %v1660_v5  ;;  %v2526_v6 = vpop.f32.mrf.mxu0  ;;  %v2618_v5 = vld [vmem:[#allocation2 + $0x188] sm:$0xff] }
 0x2e9   :  { %v1534_v7 = vmul.f32 %v1470_v4, %v1470_v4  ;;  %v1473_v12 = vsub.f32 %v2526_v6, %v2606_v9  ;;  %v1669_v8 = vsel %vm129_vm0, %v1535_v2, 0.0 }
 0x2ea   :  { %1670 = vadd.xlane.f32.xlu0 %v1669_v8  ;;  %v1297_v49 = vpop.f32.mrf.mxu0  ;;  %v2619_v8 = vld [vmem:[#allocation2 + $0x180] sm:$0xff] }
 0x2eb   :  { %v1537_v11 = vmul.f32 %v1473_v12, %v1473_v12  ;;  %v1472_v54 = vsub.f32 %v1297_v49, %v2607_v25  ;;  %v1666_v36 = vsel %vm129_vm0, %v1534_v7, 0.0 }
 0x2ec   :  { %1667 = vadd.xlane.f32.xlu1 %v1666_v36  ;;  %v2529_v38 = vpop.f32.mrf.mxu0  ;;  %v2620_v36 = vld [vmem:[#allocation2 + $0x198] sm:$0xff] }
 0x2ed   :  { %v1536_v13 = vmul.f32 %v1472_v54, %v1472_v54  ;;  %v1475_v14 = vsub.f32 %v2529_v38, %v2608_v57  ;;  %v1675_v10 = vsel %vm129_vm0, %v1537_v11, 0.0 }
 0x2ee   :  { %1676 = vadd.xlane.f32.xlu0 %v1675_v10  ;;  %v1307_v15 = vpop.f32.mrf.mxu0  ;;  %v2621_v10 = vld [vmem:[#allocation2 + $0x190] sm:$0xff] }
 0x2ef   :  { %v1539_v17 = vmul.f32 %v1475_v14, %v1475_v14  ;;  %v1474_v58 = vsub.f32 %v1307_v15, %v2609_v16  ;;  %v1672_v18 = vsel %vm129_vm0, %v1536_v13, 0.0 }
 0x2f0   :  { %1673 = vadd.xlane.f32.xlu1 %v1672_v18  ;;  %v2532_v30 = vpop.f32.mrf.mxu0  ;;  %v2622_v18 = vld [vmem:[#allocation2 + $0x1a8] sm:$0xff] }
 0x2f1   :  { %v1538_v19 = vmul.f32 %v1474_v58, %v1474_v58  ;;  %v1477_v21 = vsub.f32 %v2532_v30, %v2610_v20  ;;  %v1681_v28 = vsel %vm129_vm0, %v1539_v17, 0.0 }
 0x2f2   :  { %1682 = vadd.xlane.f32.xlu0 %v1681_v28  ;;  %v1317_v22 = vpop.f32.mrf.mxu0  ;;  %v2623_v28 = vld [vmem:[#allocation2 + $0x1a0] sm:$0xff] }
 0x2f3   :  { %v1541_v23 = vmul.f32 %v1477_v21, %v1477_v21  ;;  %v1476_v26 = vsub.f32 %v1317_v22, %v2611_v24  ;;  %v1678_v32 = vsel %vm129_vm0, %v1538_v19, 0.0 }
 0x2f4   :  { %1679 = vadd.xlane.f32.xlu1 %v1678_v32  ;;  %v2535_v34 = vpop.f32.mrf.mxu0  ;;  %v2624_v32 = vld [vmem:[#allocation2 + $0x1b8] sm:$0xff] }
 0x2f5   :  { %v1540_v39 = vmul.f32 %v1476_v26, %v1476_v26  ;;  %v1479_v40 = vsub.f32 %v2535_v34, %v2612_v35  ;;  %v1687_v37 = vsel %vm129_vm0, %v1541_v23, 0.0 }
 0x2f6   :  { %1688 = vadd.xlane.f32.xlu0 %v1687_v37  ;;  %v1327_v41 = vpop.f32.mrf.mxu0  ;;  %v2625_v37 = vld [vmem:[#allocation2 + $0x1b0] sm:$0xff] }
 0x2f7   :  { %v1543_v42 = vmul.f32 %v1479_v40, %v1479_v40  ;;  %v1478_v45 = vsub.f32 %v1327_v41, %v2613_v43  ;;  %v1684_v46 = vsel %vm129_vm0, %v1540_v39, 0.0 }
 0x2f8   :  { %1685 = vadd.xlane.f32.xlu1 %v1684_v46  ;;  %v2538_v31 = vpop.f32.mrf.mxu0  ;;  %v2626_v46 = vld [vmem:[#allocation2 + $0x1c8] sm:$0xff] }
 0x2f9   :  { %v1542_v33 = vmul.f32 %v1478_v45, %v1478_v45  ;;  %v1481_v48 = vsub.f32 %v2538_v31, %v2614_v47  ;;  %v1693_v50 = vsel %vm129_vm0, %v1543_v42, 0.0 }
 0x2fa   :  { %1694 = vadd.xlane.f32.xlu0 %v1693_v50  ;;  %v1337_v51 = vpop.f32.mrf.mxu0  ;;  %v2627_v50 = vld [vmem:[#allocation2 + $0x1c0] sm:$0xff] }
 0x2fb   :  { %v1545_v52 = vmul.f32 %v1481_v48, %v1481_v48  ;;  %v1480_v53 = vsub.f32 %v1337_v51, %v2615_v27  ;;  %v1690_v55 = vsel %vm129_vm0, %v1542_v33, 0.0 }
 0x2fc   :  { %1691 = vadd.xlane.f32.xlu1 %v1690_v55  ;;  %v2541_v29 = vpop.f32.mrf.mxu0  ;;  %v2628_v55 = vld [vmem:[#allocation2 + $0x1d8] sm:$0xff] }
 0x2fd   :  { %v1544_v56 = vmul.f32 %v1480_v53, %v1480_v53  ;;  %v1483_v60 = vsub.f32 %v2541_v29, %v2616_v59  ;;  %v1699_v61 = vsel %vm129_vm0, %v1545_v52, 0.0 }
 0x2fe   :  { %1700 = vadd.xlane.f32.xlu0 %v1699_v61  ;;  %v1347_v62 = vpop.f32.mrf.mxu0  ;;  %v2629_v61 = vld [vmem:[#allocation2 + $0x1d0] sm:$0xff] }
 0x2ff   :  { %v1547_v63 = vmul.f32 %v1483_v60, %v1483_v60  ;;  %v1482_v1 = vsub.f32 %v1347_v62, %v2617_v0  ;;  %v1696_v2 = vsel %vm129_vm0, %v1544_v56, 0.0 }
 0x300   :  { %1697 = vadd.xlane.f32.xlu1 %v1696_v2  ;;  %v2544_v3 = vpop.f32.mrf.mxu0  ;;  %v2630_v2 = vld [vmem:[#allocation2 + $0x1e8] sm:$0xff] }
 0x301   :  { %v1546_v4 = vmul.f32 %v1482_v1, %v1482_v1  ;;  %v1485_v6 = vsub.f32 %v2544_v3, %v2618_v5  ;;  %v1705_v7 = vsel %vm129_vm0, %v1547_v63, 0.0 }
 0x302   :  { %1706 = vadd.xlane.f32.xlu0 %v1705_v7  ;;  %v1357_v9 = vpop.f32.mrf.mxu0  ;;  %v2631_v7 = vld [vmem:[#allocation2 + $0x1e0] sm:$0xff] }
 0x303   :  { %v1549_v12 = vmul.f32 %v1485_v6, %v1485_v6  ;;  %v1484_v49 = vsub.f32 %v1357_v9, %v2619_v8  ;;  %v1702_v11 = vsel %vm129_vm0, %v1546_v4, 0.0 }
 0x304   :  { %1703 = vadd.xlane.f32.xlu1 %v1702_v11  ;;  %v2547_v25 = vpop.f32.mrf.mxu0  ;;  %v2632_v11 = vld [vmem:[#allocation2 + $0x1f8] sm:$0xff] }
 0x305   :  { %v1548_v54 = vmul.f32 %v1484_v49, %v1484_v49  ;;  %v1487_v38 = vsub.f32 %v2547_v25, %v2620_v36  ;;  %v1711_v13 = vsel %vm129_vm0, %v1549_v12, 0.0 }
 0x306   :  { %1712 = vadd.xlane.f32.xlu0 %v1711_v13  ;;  %v1367_v57 = vpop.f32.mrf.mxu0 }
 0x307   :  { %v1551_v14 = vmul.f32 %v1487_v38, %v1487_v38  ;;  %v1486_v15 = vsub.f32 %v1367_v57, %v2621_v10  ;;  %v1708_v17 = vsel %vm129_vm0, %v1548_v54, 0.0  ;;  %v2633_v57 = vld [vmem:[#allocation2 + $0x1f0] sm:$0xff] }
 0x308   :  { %1709 = vadd.xlane.f32.xlu1 %v1708_v17  ;;  %v2550_v16 = vpop.f32.mrf.mxu0 }
 0x309   :  { %v1550_v58 = vmul.f32 %v1486_v15, %v1486_v15  ;;  %v1489_v30 = vsub.f32 %v2550_v16, %v2622_v18  ;;  %v1717_v19 = vsel %vm129_vm0, %v1551_v14, 0.0 }
 0x30a   :  { %1718 = vadd.xlane.f32.xlu0 %v1717_v19  ;;  %v1377_v20 = vpop.f32.mrf.mxu0 }
 0x30b   :  { %v1553_v21 = vmul.f32 %v1489_v30, %v1489_v30  ;;  %v1488_v22 = vsub.f32 %v1377_v20, %v2623_v28  ;;  %v1714_v23 = vsel %vm129_vm0, %v1550_v58, 0.0 }
 0x30c   :  { %1715 = vadd.xlane.f32.xlu1 %v1714_v23  ;;  %v2553_v24 = vpop.f32.mrf.mxu0 }
 0x30d   :  { %v1552_v26 = vmul.f32 %v1488_v22, %v1488_v22  ;;  %v1491_v34 = vsub.f32 %v2553_v24, %v2624_v32  ;;  %v1723_v39 = vsel %vm129_vm0, %v1553_v21, 0.0 }
 0x30e   :  { %1724 = vadd.xlane.f32.xlu0 %v1723_v39  ;;  %v1387_v35 = vpop.f32.mrf.mxu0 }
 0x30f   :  { %v1555_v40 = vmul.f32 %v1491_v34, %v1491_v34  ;;  %v1490_v41 = vsub.f32 %v1387_v35, %v2625_v37  ;;  %v1720_v42 = vsel %vm129_vm0, %v1552_v26, 0.0 }
 0x310   :  { %1721 = vadd.xlane.f32.xlu1 %v1720_v42  ;;  %v2556_v43 = vpop.f32.mrf.mxu0 }
 0x311   :  { %v1554_v45 = vmul.f32 %v1490_v41, %v1490_v41  ;;  %v1493_v31 = vsub.f32 %v2556_v43, %v2626_v46  ;;  %v1729_v33 = vsel %vm129_vm0, %v1555_v40, 0.0 }
 0x312   :  { %1730 = vadd.xlane.f32.xlu0 %v1729_v33  ;;  %v1397_v47 = vpop.f32.mrf.mxu0 }
 0x313   :  { %v1557_v48 = vmul.f32 %v1493_v31, %v1493_v31  ;;  %v1492_v51 = vsub.f32 %v1397_v47, %v2627_v50  ;;  %v1726_v52 = vsel %vm129_vm0, %v1554_v45, 0.0  ;;  %v1569_v18 = vpop.xlane.xlu1 %1568 }
 0x314   :  { %1727 = vadd.xlane.f32.xlu1 %v1726_v52  ;;  %v2559_v27 = vpop.f32.mrf.mxu0  ;;  %v2012_v20 = vsel %vm2010_vm3, %v1569_v18, 0.0 }
 0x315   :  { %v1556_v53 = vmul.f32 %v1492_v51, %v1492_v51  ;;  %v1495_v29 = vsub.f32 %v2559_v27, %v2628_v55  ;;  %v1735_v56 = vsel %vm129_vm0, %v1557_v48, 0.0  ;;  %v1566_v38 = vpop.xlane.xlu0 %1565 }
 0x316   :  { %1736 = vadd.xlane.f32.xlu0 %v1735_v56  ;;  %v1407_v59 = vpop.f32.mrf.mxu0  ;;  %v2011_v30 = vsel %vm2010_vm3, %v1566_v38, 0.0 }
 0x317   :  { %v1559_v60 = vmul.f32 %v1495_v29, %v1495_v29  ;;  %v1494_v62 = vsub.f32 %v1407_v59, %v2629_v61  ;;  %v1732_v63 = vsel %vm129_vm0, %v1556_v53, 0.0  ;;  %v2013_v28 = vadd.f32 %v2012_v20, %v2011_v30 }
 0x318   :  { %1733 = vadd.xlane.f32.xlu1 %v1732_v63  ;;  %v2562_v0 = vpop.f32.mrf.mxu0 }
 0x319   :  { %v1558_v1 = vmul.f32 %v1494_v62, %v1494_v62  ;;  %v1497_v3 = vsub.f32 %v2562_v0, %v2630_v2  ;;  %v1741_v4 = vsel %vm129_vm0, %v1559_v60, 0.0 }
 0x31a   :  { %1742 = vadd.xlane.f32.xlu0 %v1741_v4  ;;  %v1417_v5 = vpop.f32.mrf.mxu0 }
 0x31b   :  { %v1561_v6 = vmul.f32 %v1497_v3, %v1497_v3  ;;  %v1496_v9 = vsub.f32 %v1417_v5, %v2631_v7  ;;  %v1738_v12 = vsel %vm129_vm0, %v1558_v1, 0.0 }
 0x31c   :  { %1739 = vadd.xlane.f32.xlu1 %v1738_v12  ;;  %v2565_v8 = vpop.f32.mrf.mxu0 }
 0x31d   :  { %v1560_v49 = vmul.f32 %v1496_v9, %v1496_v9  ;;  %v1499_v25 = vsub.f32 %v2565_v8, %v2632_v11  ;;  %v1747_v54 = vsel %vm129_vm0, %v1561_v6, 0.0  ;;  %v1572_v16 = vpop.xlane.xlu0 %1571 }
 0x31e   :  { %1748 = vadd.xlane.f32.xlu0 %v1747_v54  ;;  %v1427_v36 = vpop.f32.mrf.mxu0  ;;  %v2014_v21 = vsel %vm2010_vm3, %v1572_v16, 0.0 }
 0x31f   :  { %v1563_v13 = vmul.f32 %v1499_v25, %v1499_v25  ;;  %v1498_v14 = vsub.f32 %v1427_v36, %v2633_v57  ;;  %v1744_v10 = vsel %vm129_vm0, %v1560_v49, 0.0  ;;  %v2015_v24 = vadd.f32 %v2014_v21, %v2013_v28 }
 0x320   :  { %1745 = vadd.xlane.f32.xlu1 %v1744_v10 }
 0x321   :  { %v1562_v15 = vmul.f32 %v1498_v14, %v1498_v14  ;;  %v1753_v17 = vsel %vm129_vm0, %v1563_v13, 0.0  ;;  %v1575_v19 = vpop.xlane.xlu0 %1574 }
 0x322   :  { %1754 = vadd.xlane.f32.xlu0 %v1753_v17  ;;  %v2016_v23 = vsel %vm2010_vm3, %v1575_v19, 0.0 }
 0x323   :  { %v1750_v58 = vsel %vm129_vm0, %v1562_v15, 0.0  ;;  %v2017_v32 = vadd.f32 %v2016_v23, %v2015_v24 }
 0x324   :  { %1751 = vadd.xlane.f32.xlu1 %v1750_v58 }
 0x325   :  { %v1578_v22 = vpop.xlane.xlu1 %1577  ;;  %v1581_v39 = vpop.xlane.xlu0 %1580 }
 0x326   :  { %v2018_v26 = vsel %vm2010_vm3, %v1578_v22, 0.0  ;;  %v2020_v40 = vsel %vm2010_vm3, %v1581_v39, 0.0 }
 0x327   :  { %v2019_v34 = vadd.f32 %v2018_v26, %v2017_v32 }
 0x329   :  { %v2021_v41 = vadd.f32 %v2020_v40, %v2019_v34 }
 0x32b   :  { %v1587_v42 = vpop.xlane.xlu0 %1586 }
 0x32c   :  { %v2024_v46 = vsel %vm2010_vm3, %v1587_v42, 0.0 }
 0x32d   :  { %v1584_v35 = vpop.xlane.xlu1 %1583 }
 0x32e   :  { %v2022_v37 = vsel %vm2010_vm3, %v1584_v35, 0.0 }
 0x32f   :  { %v2023_v43 = vadd.f32 %v2022_v37, %v2021_v41 }
 0x331   :  { %v2025_v33 = vadd.f32 %v2024_v46, %v2023_v43 }
 0x333   :  { %v1593_v47 = vpop.xlane.xlu0 %1592 }
 0x334   :  { %v2028_v51 = vsel %vm2010_vm3, %v1593_v47, 0.0 }
 0x335   :  { %v1590_v45 = vpop.xlane.xlu1 %1589 }
 0x336   :  { %v2026_v31 = vsel %vm2010_vm3, %v1590_v45, 0.0 }
 0x337   :  { %v2027_v48 = vadd.f32 %v2026_v31, %v2025_v33 }
 0x339   :  { %v2029_v27 = vadd.f32 %v2028_v51, %v2027_v48 }
 0x33b   :  { %v1599_v53 = vpop.xlane.xlu0 %1598 }
 0x33c   :  { %v2032_v56 = vsel %vm2010_vm3, %v1599_v53, 0.0 }
 0x33d   :  { %v1596_v50 = vpop.xlane.xlu1 %1595 }
 0x33e   :  { %v2030_v52 = vsel %vm2010_vm3, %v1596_v50, 0.0 }
 0x33f   :  { %v2031_v55 = vadd.f32 %v2030_v52, %v2029_v27 }
 0x341   :  { %v2033_v61 = vadd.f32 %v2032_v56, %v2031_v55 }
 0x343   :  { %v1605_v60 = vpop.xlane.xlu0 %1604 }
 0x344   :  { %v2036_v0 = vsel %vm2010_vm3, %v1605_v60, 0.0 }
 0x345   :  { %v1602_v29 = vpop.xlane.xlu1 %1601 }
 0x346   :  { %v2034_v59 = vsel %vm2010_vm3, %v1602_v29, 0.0 }
 0x347   :  { %v2035_v62 = vadd.f32 %v2034_v59, %v2033_v61 }
 0x349   :  { %v2037_v2 = vadd.f32 %v2036_v0, %v2035_v62 }
 0x34b   :  { %v1611_v63 = vpop.xlane.xlu0 %1610 }
 0x34c   :  { %v2040_v6 = vsel %vm2010_vm3, %v1611_v63, 0.0 }
 0x34d   :  { %v1608_v1 = vpop.xlane.xlu1 %1607 }
 0x34e   :  { %v2038_v3 = vsel %vm2010_vm3, %v1608_v1, 0.0 }
 0x34f   :  { %v2039_v4 = vadd.f32 %v2038_v3, %v2037_v2  ;;  %v1617_v5 = vpop.xlane.xlu0 %1616 }
 0x350   :  { %v2044_v11 = vsel %vm2010_vm3, %v1617_v5, 0.0 }
 0x351   :  { %v1614_v7 = vpop.xlane.xlu1 %1613  ;;  %v2041_v9 = vadd.f32 %v2040_v6, %v2039_v4 }
 0x352   :  { %v2042_v12 = vsel %vm2010_vm3, %v1614_v7, 0.0 }
 0x353   :  { %v2043_v8 = vadd.f32 %v2042_v12, %v2041_v9  ;;  %v1623_v49 = vpop.xlane.xlu0 %1622 }
 0x354   :  { %v2048_v57 = vsel %vm2010_vm3, %v1623_v49, 0.0 }
 0x355   :  { %v1620_v25 = vpop.xlane.xlu1 %1619  ;;  %v2045_v54 = vadd.f32 %v2044_v11, %v2043_v8 }
 0x356   :  { %v2046_v36 = vsel %vm2010_vm3, %v1620_v25, 0.0 }
 0x357   :  { %v2047_v38 = vadd.f32 %v2046_v36, %v2045_v54  ;;  %v1629_v13 = vpop.xlane.xlu0 %1628 }
 0x358   :  { %v2052_v58 = vsel %vm2010_vm3, %v1629_v13, 0.0 }
 0x359   :  { %v1626_v14 = vpop.xlane.xlu1 %1625  ;;  %v2049_v10 = vadd.f32 %v2048_v57, %v2047_v38 }
 0x35a   :  { %v2050_v15 = vsel %vm2010_vm3, %v1626_v14, 0.0 }
 0x35b   :  { %v2051_v17 = vadd.f32 %v2050_v15, %v2049_v10  ;;  %v1635_v16 = vpop.xlane.xlu0 %1634 }
 0x35c   :  { %v2056_v28 = vsel %vm2010_vm3, %v1635_v16, 0.0 }
 0x35d   :  { %v1632_v18 = vpop.xlane.xlu1 %1631  ;;  %v2053_v30 = vadd.f32 %v2052_v58, %v2051_v17 }
 0x35e   :  { %v2054_v19 = vsel %vm2010_vm3, %v1632_v18, 0.0 }
 0x35f   :  { %v2055_v20 = vadd.f32 %v2054_v19, %v2053_v30  ;;  %v1641_v21 = vpop.xlane.xlu0 %1640 }
 0x360   :  { %v2060_v34 = vsel %vm2010_vm3, %v1641_v21, 0.0 }
 0x361   :  { %v1638_v22 = vpop.xlane.xlu1 %1637  ;;  %v2057_v23 = vadd.f32 %v2056_v28, %v2055_v20 }
 0x362   :  { %v2058_v24 = vsel %vm2010_vm3, %v1638_v22, 0.0 }
 0x363   :  { %v2059_v26 = vadd.f32 %v2058_v24, %v2057_v23  ;;  %v1647_v32 = vpop.xlane.xlu0 %1646 }
 0x364   :  { %v2064_v42 = vsel %vm2010_vm3, %v1647_v32, 0.0 }
 0x365   :  { %v1644_v39 = vpop.xlane.xlu1 %1643  ;;  %v2061_v35 = vadd.f32 %v2060_v34, %v2059_v26 }
 0x366   :  { %v2062_v40 = vsel %vm2010_vm3, %v1644_v39, 0.0 }
 0x367   :  { %v2063_v37 = vadd.f32 %v2062_v40, %v2061_v35  ;;  %v1653_v41 = vpop.xlane.xlu0 %1652 }
 0x368   :  { %v2068_v47 = vsel %vm2010_vm3, %v1653_v41, 0.0 }
 0x369   :  { %v1650_v43 = vpop.xlane.xlu1 %1649  ;;  %v2065_v45 = vadd.f32 %v2064_v42, %v2063_v37 }
 0x36a   :  { %v2066_v46 = vsel %vm2010_vm3, %v1650_v43, 0.0 }
 0x36b   :  { %v2067_v31 = vadd.f32 %v2066_v46, %v2065_v45  ;;  %v1659_v33 = vpop.xlane.xlu0 %1658 }
 0x36c   :  { %v2072_v53 = vsel %vm2010_vm3, %v1659_v33, 0.0 }
 0x36d   :  { %v1656_v48 = vpop.xlane.xlu1 %1655  ;;  %v2069_v50 = vadd.f32 %v2068_v47, %v2067_v31 }
 0x36e   :  { %v2070_v51 = vsel %vm2010_vm3, %v1656_v48, 0.0 }
 0x36f   :  { %v2071_v52 = vadd.f32 %v2070_v51, %v2069_v50  ;;  %v1665_v27 = vpop.xlane.xlu0 %1664 }
 0x370   :  { %v2076_v61 = vsel %vm2010_vm3, %v1665_v27, 0.0 }
 0x371   :  { %v1662_v55 = vpop.xlane.xlu1 %1661  ;;  %v2073_v29 = vadd.f32 %v2072_v53, %v2071_v52 }
 0x372   :  { %v2074_v56 = vsel %vm2010_vm3, %v1662_v55, 0.0 }
 0x373   :  { %v2075_v59 = vadd.f32 %v2074_v56, %v2073_v29  ;;  %v1671_v60 = vpop.xlane.xlu0 %1670 }
 0x374   :  { %v2080_v3 = vsel %vm2010_vm3, %v1671_v60, 0.0 }
 0x375   :  { %v1668_v62 = vpop.xlane.xlu1 %1667  ;;  %v2077_v63 = vadd.f32 %v2076_v61, %v2075_v59 }
 0x376   :  { %v2078_v0 = vsel %vm2010_vm3, %v1668_v62, 0.0 }
 0x377   :  { %v2079_v1 = vadd.f32 %v2078_v0, %v2077_v63  ;;  %v1677_v2 = vpop.xlane.xlu0 %1676 }
 0x378   :  { %v2084_v12 = vsel %vm2010_vm3, %v1677_v2, 0.0 }
 0x379   :  { %v1674_v4 = vpop.xlane.xlu1 %1673  ;;  %v2081_v5 = vadd.f32 %v2080_v3, %v2079_v1 }
 0x37a   :  { %v2082_v6 = vsel %vm2010_vm3, %v1674_v4, 0.0 }
 0x37b   :  { %v2083_v7 = vadd.f32 %v2082_v6, %v2081_v5  ;;  %v1683_v9 = vpop.xlane.xlu0 %1682 }
 0x37c   :  { %v2088_v36 = vsel %vm2010_vm3, %v1683_v9, 0.0 }
 0x37d   :  { %v1680_v8 = vpop.xlane.xlu1 %1679  ;;  %v2085_v49 = vadd.f32 %v2084_v12, %v2083_v7 }
 0x37e   :  { %v2086_v11 = vsel %vm2010_vm3, %v1680_v8, 0.0 }
 0x37f   :  { %v2087_v25 = vadd.f32 %v2086_v11, %v2085_v49  ;;  %v1689_v54 = vpop.xlane.xlu0 %1688 }
 0x380   :  { %v2092_v15 = vsel %vm2010_vm3, %v1689_v54, 0.0 }
 0x381   :  { %v1686_v38 = vpop.xlane.xlu1 %1685  ;;  %v2089_v13 = vadd.f32 %v2088_v36, %v2087_v25 }
 0x382   :  { %v2090_v57 = vsel %vm2010_vm3, %v1686_v38, 0.0 }
 0x383   :  { %v2091_v14 = vadd.f32 %v2090_v57, %v2089_v13  ;;  %v1695_v10 = vpop.xlane.xlu0 %1694 }
 0x384   :  { %v2096_v19 = vsel %vm2010_vm3, %v1695_v10, 0.0 }
 0x385   :  { %v1692_v17 = vpop.xlane.xlu1 %1691  ;;  %v2093_v16 = vadd.f32 %v2092_v15, %v2091_v14 }
 0x386   :  { %v2094_v58 = vsel %vm2010_vm3, %v1692_v17, 0.0 }
 0x387   :  { %v2095_v18 = vadd.f32 %v2094_v58, %v2093_v16  ;;  %v1701_v30 = vpop.xlane.xlu0 %1700 }
 0x388   :  { %v2100_v24 = vsel %vm2010_vm3, %v1701_v30, 0.0 }
 0x389   :  { %v1698_v20 = vpop.xlane.xlu1 %1697  ;;  %v2097_v21 = vadd.f32 %v2096_v19, %v2095_v18 }
 0x38a   :  { %v2098_v28 = vsel %vm2010_vm3, %v1698_v20, 0.0 }
 0x38b   :  { %v2099_v22 = vadd.f32 %v2098_v28, %v2097_v21  ;;  %v1707_v23 = vpop.xlane.xlu0 %1706 }
 0x38c   :  { %v2104_v40 = vsel %vm2010_vm3, %v1707_v23, 0.0  ;;  %v2148_v23 = vand.u32 127, %v548_v44 }
 0x38d   :  { %v1704_v26 = vpop.xlane.xlu1 %1703  ;;  %v2101_v32 = vadd.f32 %v2100_v24, %v2099_v22 }
 0x38e   :  { %v2102_v34 = vsel %vm2010_vm3, %v1704_v26, 0.0  ;;  %vm2149_vm0 = vcmp.eq.s32.totalorder %v2148_v23, 0 }
 0x38f   :  { %v2103_v39 = vadd.f32 %v2102_v34, %v2101_v32  ;;  %v1713_v35 = vpop.xlane.xlu0 %1712 }
 0x390   :  { %v2108_v46 = vsel %vm2010_vm3, %v1713_v35, 0.0 }
 0x391   :  { %v1710_v37 = vpop.xlane.xlu1 %1709  ;;  %v2105_v41 = vadd.f32 %v2104_v40, %v2103_v39 }
 0x392   :  { %v2106_v42 = vsel %vm2010_vm3, %v1710_v37, 0.0 }
 0x393   :  { %v2107_v43 = vadd.f32 %v2106_v42, %v2105_v41  ;;  %v1719_v45 = vpop.xlane.xlu0 %1718 }
 0x394   :  { %v2112_v51 = vsel %vm2010_vm3, %v1719_v45, 0.0 }
 0x395   :  { %v1716_v31 = vpop.xlane.xlu1 %1715  ;;  %v2109_v33 = vadd.f32 %v2108_v46, %v2107_v43 }
 0x396   :  { %v2110_v47 = vsel %vm2010_vm3, %v1716_v31, 0.0 }
 0x397   :  { %v2111_v48 = vadd.f32 %v2110_v47, %v2109_v33  ;;  %v1725_v50 = vpop.xlane.xlu0 %1724 }
 0x398   :  { %v2116_v56 = vsel %vm2010_vm3, %v1725_v50, 0.0 }
 0x399   :  { %v1722_v52 = vpop.xlane.xlu1 %1721  ;;  %v2113_v27 = vadd.f32 %v2112_v51, %v2111_v48 }
 0x39a   :  { %v2114_v53 = vsel %vm2010_vm3, %v1722_v52, 0.0 }
 0x39b   :  { %v2115_v55 = vadd.f32 %v2114_v53, %v2113_v27  ;;  %v1731_v29 = vpop.xlane.xlu0 %1730 }
 0x39c   :  { %v2120_v0 = vsel %vm2010_vm3, %v1731_v29, 0.0 }
 0x39d   :  { %v1728_v59 = vpop.xlane.xlu1 %1727  ;;  %v2117_v60 = vadd.f32 %v2116_v56, %v2115_v55 }
 0x39e   :  { %v2118_v61 = vsel %vm2010_vm3, %v1728_v59, 0.0 }
 0x39f   :  { %v2119_v62 = vadd.f32 %v2118_v61, %v2117_v60  ;;  %v1737_v63 = vpop.xlane.xlu0 %1736 }
 0x3a0   :  { %v2124_v6 = vsel %vm2010_vm3, %v1737_v63, 0.0 }
 0x3a1   :  { %v1734_v1 = vpop.xlane.xlu1 %1733  ;;  %v2121_v2 = vadd.f32 %v2120_v0, %v2119_v62 }
 0x3a2   :  { %v2122_v3 = vsel %vm2010_vm3, %v1734_v1, 0.0 }
 0x3a3   :  { %v2123_v4 = vadd.f32 %v2122_v3, %v2121_v2  ;;  %v1743_v5 = vpop.xlane.xlu0 %1742 }
 0x3a4   :  { %v2128_v11 = vsel %vm2010_vm3, %v1743_v5, 0.0 }
 0x3a5   :  { %v1740_v7 = vpop.xlane.xlu1 %1739  ;;  %v2125_v9 = vadd.f32 %v2124_v6, %v2123_v4 }
 0x3a6   :  { %v2126_v12 = vsel %vm2010_vm3, %v1740_v7, 0.0 }
 0x3a7   :  { %v2127_v8 = vadd.f32 %v2126_v12, %v2125_v9  ;;  %v1749_v49 = vpop.xlane.xlu0 %1748 }
 0x3a8   :  { %v2132_v13 = vsel %vm2010_vm3, %v1749_v49, 0.0 }
 0x3a9   :  { %v1746_v25 = vpop.xlane.xlu1 %1745  ;;  %v2129_v54 = vadd.f32 %v2128_v11, %v2127_v8 }
 0x3aa   :  { %v2130_v36 = vsel %vm2010_vm3, %v1746_v25, 0.0 }
 0x3ab   :  { %v2131_v38 = vadd.f32 %v2130_v36, %v2129_v54  ;;  %v1755_v57 = vpop.xlane.xlu0 %1754 }
 0x3ac   :  { %v2136_v16 = vsel %vm2010_vm3, %v1755_v57, 0.0 }
 0x3ad   :  { %v1752_v14 = vpop.xlane.xlu1 %1751  ;;  %v2133_v10 = vadd.f32 %v2132_v13, %v2131_v38 }
 0x3ae   :  { %v2134_v15 = vsel %vm2010_vm3, %v1752_v14, 0.0 }
 0x3af   :  { %v2135_v17 = vadd.f32 %v2134_v15, %v2133_v10 }
 0x3b1   :  { %v2137_v58 = vadd.f32 %v2136_v16, %v2135_v17 }
 0x3b3   :  { %2138 = vadd.xlane.f32.xlu1 %v2137_v58 }
 0x43c   :  { %v2139_v18 = vpop.xlane.xlu1 %2138 }
 0x43d   :  { %v2140_v30 = vrot.slane %v2139_v18, 4 }
 0x43f   :  { %v2141_v19 = vadd.f32 %v2140_v30, %v2139_v18 }
 0x441   :  { %v2142_v20 = vrot.slane %v2141_v19, 2 }
 0x443   :  { %v2143_v21 = vadd.f32 %v2142_v20, %v2141_v19 }
 0x445   :  { %v2144_v28 = vrot.slane %v2143_v21, 1 }
 0x447   :  { %v2145_v22 = vadd.f32 %v2144_v28, %v2143_v21 }
 0x449   :  { %2566 = vpush %v2145_v22 }
 0x47a   :  { %s2567_s4 = spop %2566 }
 0x47b   :  { %v2150_v24 = vstv %s2567_s4 }
 0x47c   :  { %v2151_v26 = vsel %vm2149_vm0, %v2150_v24, 0.0 }
 0x47d   :  { %2152 = vst [vmem:[%s3166_s5] sm:$0x1] %v2151_v26 }
 0x47e   :  { %2161 = vsyncpa [#allocation3], 1 }

</bundles_post_ra>
